<compile_context>
chip_gen: v5e
topology: v5e:2x2
jax: 0.10.0
libtpu: 0.0.40
codegen_flags: <defaults>
</compile_context>

<pallas_src>
import functools

import jax
import jax.numpy as jnp
import numpy as np
from jax.experimental import pallas as pl
from jax.experimental.pallas import tpu as pltpu

BN_EPS = 1e-5

# Column layout of the packed per-channel parameter array `vecs` (rows, 8).
_G1, _BE1, _B2, _G2, _BE2, _W4, _B4 = range(7)


def _bn_relu(t, s, sq, gamma, beta, inv_cnt):
    """Training-mode BatchNorm (from accumulated sum / sum^2) followed by ReLU.

    t: (Cx, P) activations; s, sq, gamma, beta: (Cx, 1).
    """
    mean = s * inv_cnt
    # One-pass variance E[x^2] - mean^2, clamped at 0 against fp32 cancellation.
    # TODO(synk): switch to a two-pass E[(x-mean)^2] stats phase if activation
    # magnitudes ever make cancellation significant.
    var = jnp.maximum(sq * inv_cnt - mean * mean, 0.0)
    scale = jax.lax.rsqrt(var + BN_EPS) * gamma
    return jnp.maximum((t - mean) * scale + beta, 0.0)


def _color_feature_pre_bn(h1, w2, b2, w3, masks, H, W):
    """color_transform tail (1x1 conv -> color map) + 3x3 conv, on (Cx, H*W).

    h1: (C2, HW) ReLU'd BN1 output.  Returns z: (16, HW), the 3x3 conv output
    (bias-free; the conv bias cancels in the following BatchNorm).
    """
    HW = H * W
    cm = jnp.dot(w2, h1, preferred_element_type=jnp.float32) + b2      # (3, HW)

    # 3x3 conv, padding=1, on the flattened pixel axis: each tap is a lane
    # rotation of the color map times a {0,1} border mask (zero padding).
    rmask = {-1: masks[0:1, :], 0: None, 1: masks[1:2, :]}
    cmask = {-1: masks[2:3, :], 0: None, 1: masks[3:4, :]}
    z = None
    tap_idx = 0
    for dh in (-1, 0, 1):
        for dw in (-1, 0, 1):
            shift = dh * W + dw
            tap = cm if shift == 0 else pltpu.roll(cm, shift=(-shift) % HW, axis=1)
            if rmask[dh] is not None:
                tap = tap * rmask[dh]
            if cmask[dw] is not None:
                tap = tap * cmask[dw]
            # 9 small lane-dense (16,3)@(3,HW) MXU pushes accumulated in f32;
            # avoids any unaligned sublane concat for a single K=27 im2col dot.
            w_tap = w3[:, 3 * tap_idx:3 * (tap_idx + 1)]                # (16, 3)
            d = jnp.dot(w_tap, tap, preferred_element_type=jnp.float32)
            z = d if z is None else z + d
            tap_idx += 1
    return z                                                            # (16, HW)


def _stats_kernel(x_ref, w1_ref, w2_ref, w3_ref, vec_ref, mask_ref, stats_ref,
                  *, H, W, inv_cnt):
    """Phase 0: accumulate BN1 sum/sum^2 of conv1(x).
       Phase 1: accumulate BN2 sum/sum^2 of conv3(conv2(relu(bn1(conv1(x)))))."""
    p = pl.program_id(0)          # phase
    n = pl.program_id(1)          # image
    C2 = w1_ref.shape[0]

    @pl.when(jnp.logical_and(p == 0, n == 0))
    def _init():
        stats_ref[...] = jnp.zeros_like(stats_ref)

    x = x_ref[0]                                                        # (C, HW)
    t1 = jnp.dot(w1_ref[...], x, preferred_element_type=jnp.float32)    # (C2, HW)

    @pl.when(p == 0)
    def _phase0():
        stats_ref[0:C2, 0:1] += jnp.sum(t1, axis=1, keepdims=True)
        stats_ref[0:C2, 1:2] += jnp.sum(t1 * t1, axis=1, keepdims=True)

    @pl.when(p == 1)
    def _phase1():
        g1 = vec_ref[0:C2, _G1:_G1 + 1]
        be1 = vec_ref[0:C2, _BE1:_BE1 + 1]
        b2 = vec_ref[0:3, _B2:_B2 + 1]
        h1 = _bn_relu(t1, stats_ref[0:C2, 0:1], stats_ref[0:C2, 1:2],
                      g1, be1, inv_cnt)
        z = _color_feature_pre_bn(h1, w2_ref[...], b2, w3_ref[...],
                                  mask_ref[...], H, W)                  # (16, HW)
        stats_ref[0:16, 2:3] += jnp.sum(z, axis=1, keepdims=True)
        stats_ref[0:16, 3:4] += jnp.sum(z * z, axis=1, keepdims=True)


def _apply_kernel(x_ref, w1_ref, w2_ref, w3_ref, vec_ref, mask_ref, stats_ref,
                  o_ref, *, H, W, inv_cnt):
    """Full forward for one image given precomputed BN batch statistics."""
    C2 = w1_ref.shape[0]
    x = x_ref[0]                                                        # (C, HW)
    t1 = jnp.dot(w1_ref[...], x, preferred_element_type=jnp.float32)    # (C2, HW)

    g1 = vec_ref[0:C2, _G1:_G1 + 1]
    be1 = vec_ref[0:C2, _BE1:_BE1 + 1]
    b2 = vec_ref[0:3, _B2:_B2 + 1]
    h1 = _bn_relu(t1, stats_ref[0:C2, 0:1], stats_ref[0:C2, 1:2],
                  g1, be1, inv_cnt)
    z = _color_feature_pre_bn(h1, w2_ref[...], b2, w3_ref[...],
                              mask_ref[...], H, W)                      # (16, HW)

    g2 = vec_ref[0:16, _G2:_G2 + 1]
    be2 = vec_ref[0:16, _BE2:_BE2 + 1]
    h2 = _bn_relu(z, stats_ref[0:16, 2:3], stats_ref[0:16, 3:4],
                  g2, be2, inv_cnt)                                     # (16, HW)

    # Final 16 -> 1 conv on the VPU (a K=16, M=1 matmul barely fills the MXU),
    # then the sigmoid on the EUP.  Lane-dense (1, HW) store.
    w4 = vec_ref[0:16, _W4:_W4 + 1]                                     # (16, 1)
    b4 = vec_ref[0:1, _B4:_B4 + 1]                                      # (1, 1)
    y = jnp.sum(h2 * w4, axis=0, keepdims=True) + b4                    # (1, HW)
    o_ref[0] = jax.nn.sigmoid(y)


def _border_masks(H, W):
    """(4, H*W) {0,1} masks implementing zero padding for the 3x3 conv taps.

    Rows: [source row exists above, below, source col exists left, right]."""
    row = np.arange(H * W, dtype=np.int64) // W
    col = np.arange(H * W, dtype=np.int64) % W
    m = np.stack([row >= 1, row <= H - 2, col >= 1, col <= W - 2])
    return jnp.asarray(m.astype(np.float32))


def color_attention(x_nchw, params):
    """x_nchw: (N, C, H, W) float32 -> (N, 1, H, W) sigmoid attention map."""
    w1, w2, w3, vecs = params
    N, C, H, W = x_nchw.shape
    HW = H * W
    C2 = w1.shape[0]
    R = vecs.shape[0]
    x = x_nchw.reshape(N, C, HW).astype(jnp.float32)    # free reshape, stays NCHW
    masks = _border_masks(H, W)
    inv_cnt = 1.0 / float(N * HW)

    def const(shape):
        return pl.BlockSpec(shape, lambda *_: (0,) * len(shape))

    # Pass 1: two-phase BN statistics (per-channel sum / sum^2) accumulated
    # into a single resident output block.
    stats = pl.pallas_call(
        functools.partial(_stats_kernel, H=H, W=W, inv_cnt=inv_cnt),
        out_shape=jax.ShapeDtypeStruct((R, 4), jnp.float32),
        grid=(2, N),
        in_specs=[
            pl.BlockSpec((1, C, HW), lambda p, n: (n, 0, 0)),
            const((C2, C)), const((3, C2)), const(w3.shape),
            const(vecs.shape), const((4, HW)),
        ],
        out_specs=const((R, 4)),
        compiler_params=pltpu.CompilerParams(
            dimension_semantics=("arbitrary", "arbitrary"),
            vmem_limit_bytes=32 * 1024 * 1024),
    )(x, w1, w2, w3, vecs, masks)

    # Pass 2: batch-parallel apply; each image is independent given the stats.
    out = pl.pallas_call(
        functools.partial(_apply_kernel, H=H, W=W, inv_cnt=inv_cnt),
        out_shape=jax.ShapeDtypeStruct((N, 1, HW), jnp.float32),
        grid=(N,),
        in_specs=[
            pl.BlockSpec((1, C, HW), lambda n: (n, 0, 0)),
            const((C2, C)), const((3, C2)), const(w3.shape),
            const(vecs.shape), const((4, HW)), const((R, 4)),
        ],
        out_specs=pl.BlockSpec((1, 1, HW), lambda n: (n, 0, 0)),
        compiler_params=pltpu.CompilerParams(
            dimension_semantics=("parallel",),
            vmem_limit_bytes=32 * 1024 * 1024),
    )(x, w1, w2, w3, vecs, masks, stats)

    return out.reshape(N, 1, H, W)


def init_params(key, channel):
    """Synthetic parameters (PyTorch default Conv2d init); BN gamma=1, beta=0.

    Conv biases b1 (before BN1) and b3 (before BN2) are omitted: followed by
    training-mode BatchNorm they cancel exactly in the forward pass.
    """
    C, C2 = channel, channel // 2
    ks = jax.random.split(key, 6)

    def u(k, shape, fan_in):
        bound = 1.0 / float(fan_in) ** 0.5
        return jax.random.uniform(k, shape, jnp.float32, -bound, bound)

    return dict(
        w1=u(ks[0], (C2, C), C),              # Conv2d(C, C//2, 1): (cout, cin)
        g1=jnp.ones((C2,), jnp.float32),      # BatchNorm2d(C//2)
        be1=jnp.zeros((C2,), jnp.float32),
        w2=u(ks[1], (3, C2), C2),             # Conv2d(C//2, 3, 1)
        b2=u(ks[2], (3,), C2),
        w3=u(ks[3], (16, 3, 3, 3), 27),       # Conv2d(3, 16, 3): (cout, kh, kw, cin)
        g2=jnp.ones((16,), jnp.float32),      # BatchNorm2d(16)
        be2=jnp.zeros((16,), jnp.float32),
        w4=u(ks[4], (16,), 16),               # Conv2d(16, 1, 1)
        b4=u(ks[5], (1,), 16),
    )


def pack_params(raw, channel):
    """Pack parameters for the kernels: w1 (C2, C), w2 (3, C2),
    w3 (16, 27) [(kh, kw, cin) flattened], vecs (R, 8) [g1,be1,b2,g2,be2,w4,b4]."""
    C2 = channel // 2
    R = max(16, C2, 3)
    vecs = np.zeros((R, 8), np.float32)
    vecs[:C2, _G1] = np.asarray(raw['g1'])
    vecs[:C2, _BE1] = np.asarray(raw['be1'])
    vecs[:3, _B2] = np.asarray(raw['b2'])
    vecs[:16, _G2] = np.asarray(raw['g2'])
    vecs[:16, _BE2] = np.asarray(raw['be2'])
    vecs[:16, _W4] = np.asarray(raw['w4'])
    vecs[:1, _B4] = np.asarray(raw['b4'])
    return (raw['w1'], raw['w2'], raw['w3'].reshape(16, 27), jnp.asarray(vecs))


def color_attention_ref(x, raw):
    """Pure-JAX reference of the PyTorch forward (training-mode BatchNorm)."""
    N, C, H, W = x.shape
    xf = x.reshape(N, C, H * W).astype(jnp.float32)

    def bn_relu(t, gamma, beta):
        mean = jnp.mean(t, axis=(0, 2), keepdims=True)
        var = jnp.maximum(
            jnp.mean(t * t, axis=(0, 2), keepdims=True) - mean * mean, 0.0)
        out = ((t - mean) * jax.lax.rsqrt(var + BN_EPS)
               * gamma[None, :, None] + beta[None, :, None])
        return jnp.maximum(out, 0.0)

    t1 = jnp.einsum('oc,ncp->nop', raw['w1'], xf)
    h1 = bn_relu(t1, raw['g1'], raw['be1'])
    cmap = jnp.einsum('oc,ncp->nop', raw['w2'], h1) + raw['b2'][None, :, None]
    cmap = cmap.reshape(N, 3, H, W)
    w3_oihw = jnp.transpose(raw['w3'], (0, 3, 1, 2))       # (cout, cin, kh, kw)
    z = jax.lax.conv_general_dilated(
        cmap, w3_oihw, window_strides=(1, 1), padding=((1, 1), (1, 1)),
        dimension_numbers=('NCHW', 'OIHW', 'NCHW'))
    h2 = bn_relu(z.reshape(N, 16, H * W), raw['g2'], raw['be2'])
    y = jnp.einsum('c,ncp->np', raw['w4'], h2)[:, None, :] + raw['b4'][0]
    return jax.nn.sigmoid(y).reshape(N, 1, H, W)


if __name__ == "__main__":
    key = jax.random.PRNGKey(0)
    kx, kp = jax.random.split(key)

    channel = 4
    x = jax.random.normal(kx, (2, channel, 16, 16), jnp.float32)  # NCHW like PyTorch
    raw = init_params(kp, channel)
    params = pack_params(raw, channel)

    out = jax.jit(color_attention)(x, params)
    out = jax.block_until_ready(out)

    assert out.shape == (2, 1, 16, 16), out.shape
    assert bool(jnp.all(jnp.isfinite(out)))
    assert bool(jnp.all((out >= 0.0) & (out <= 1.0)))  # sigmoid output range

    ref = color_attention_ref(x, raw)
    max_err = float(jnp.max(jnp.abs(out - ref)))
    assert max_err < 2e-2, f"mismatch vs pure-JAX reference: {max_err}"

    print("KERNEL_OK")
</pallas_src>

<mosaic_0001>
module attributes {stable_mosaic.version = 11 : i64} {
  func.func @_stats_kernel(%arg0: i32, %arg1: i32, %arg2: memref<1x4x256xf32, #tpu.memory_space<vmem>>, %arg3: memref<2x4xf32, #tpu.memory_space<vmem>>, %arg4: memref<3x2xf32, #tpu.memory_space<vmem>>, %arg5: memref<16x27xf32, #tpu.memory_space<vmem>>, %arg6: memref<16x8xf32, #tpu.memory_space<vmem>>, %arg7: memref<4x256xf32, #tpu.memory_space<vmem>>, %arg8: memref<16x4xf32, #tpu.memory_space<vmem>>) attributes {dimension_semantics = [#tpu.dimension_semantics<arbitrary>, #tpu.dimension_semantics<arbitrary>], iteration_bounds = array<i64: 2, 2>, scalar_prefetch = 0 : i64, scratch_operands = 0 : i64, tpu.core_type = #tpu.core_type<tc>, window_params = [{transform_indices = @transform_0, window_bounds = array<i64: 1, 4, 256>}, {pipeline_mode = #tpu.pipeline_mode<synchronous>, transform_indices = @transform_1, window_bounds = array<i64: 2, 4>}, {pipeline_mode = #tpu.pipeline_mode<synchronous>, transform_indices = @transform_2, window_bounds = array<i64: 3, 2>}, {pipeline_mode = #tpu.pipeline_mode<synchronous>, transform_indices = @transform_3, window_bounds = array<i64: 16, 27>}, {pipeline_mode = #tpu.pipeline_mode<synchronous>, transform_indices = @transform_4, window_bounds = array<i64: 16, 8>}, {pipeline_mode = #tpu.pipeline_mode<synchronous>, transform_indices = @transform_5, window_bounds = array<i64: 4, 256>}, {pipeline_mode = #tpu.pipeline_mode<synchronous>, transform_indices = @transform_6, window_bounds = array<i64: 16, 4>}]} {
    %c0_i32 = arith.constant 0 : i32
    %0 = arith.cmpi eq, %arg0, %c0_i32 : i32
    %c0_i32_0 = arith.constant 0 : i32
    %1 = arith.cmpi eq, %arg1, %c0_i32_0 : i32
    %2 = arith.andi %0, %1 : i1
    %3 = arith.extui %2 : i1 to i32
    %c0_i32_1 = arith.constant 0 : i32
    %4 = arith.cmpi ne, %3, %c0_i32_1 : i32
    scf.if %4 {
      %cst_9 = arith.constant 0.000000e+00 : f32
      %15 = vector.broadcast %cst_9 : f32 to vector<16x4xf32>
      %c0_10 = arith.constant 0 : index
      %c0_11 = arith.constant 0 : index
      %16 = vector.load %arg8[%c0_10, %c0_11] : memref<16x4xf32, #tpu.memory_space<vmem>>, vector<16x4xf32>
      tpu.vector_store %arg8[%c0_10, %c0_11], %15 {strides = array<i32>} : memref<16x4xf32, #tpu.memory_space<vmem>>, vector<16x4xf32>,
    } else {
    }
    %c0 = arith.constant 0 : index
    %c0_2 = arith.constant 0 : index
    %c0_3 = arith.constant 0 : index
    %5 = vector.load %arg2[%c0, %c0_2, %c0_3] : memref<1x4x256xf32, #tpu.memory_space<vmem>>, vector<1x4x256xf32>
    %6 = vector.shape_cast %5 : vector<1x4x256xf32> to vector<4x256xf32>
    %c0_4 = arith.constant 0 : index
    %c0_5 = arith.constant 0 : index
    %7 = vector.load %arg3[%c0_4, %c0_5] : memref<2x4xf32, #tpu.memory_space<vmem>>, vector<2x4xf32>
    %cst = arith.constant dense<0.000000e+00> : vector<2x256xf32>
    %8 = tpu.matmul %7, %6, %cst {dimension_numbers = #tpu.dot_dimension_numbers<[1], [0], [0], [1], [0, 0, 1, 1], [], []>} : vector<2x4xf32>, vector<4x256xf32>, vector<2x256xf32> -> vector<2x256xf32>
    %c0_i32_6 = arith.constant 0 : i32
    %9 = arith.cmpi eq, %arg0, %c0_i32_6 : i32
    %10 = arith.extui %9 : i1 to i32
    %c0_i32_7 = arith.constant 0 : i32
    %11 = arith.cmpi ne, %10, %c0_i32_7 : i32
    scf.if %11 {
      %c0_9 = arith.constant 0 : index
      %c0_10 = arith.constant 0 : index
      %15 = vector.load %arg8[%c0_9, %c0_10] : memref<16x4xf32, #tpu.memory_space<vmem>>, vector<2x1xf32>
      %cst_11 = arith.constant dense<0.000000e+00> : vector<2xf32>
      %16 = vector.multi_reduction <add>, %8, %cst_11 [1] : vector<2x256xf32> to vector<2xf32>
      %17 = vector.shape_cast %16 : vector<2xf32> to vector<2x1xf32>
      %18 = arith.addf %15, %17 : vector<2x1xf32>
      %c0_12 = arith.constant 0 : index
      %c0_13 = arith.constant 0 : index
      %19 = vector.load %arg8[%c0_12, %c0_13] : memref<16x4xf32, #tpu.memory_space<vmem>>, vector<2x1xf32>
      tpu.vector_store %arg8[%c0_12, %c0_13], %18 {strides = array<i32>} : memref<16x4xf32, #tpu.memory_space<vmem>>, vector<2x1xf32>,
      %c0_14 = arith.constant 0 : index
      %c1 = arith.constant 1 : index
      %20 = vector.load %arg8[%c0_14, %c1] : memref<16x4xf32, #tpu.memory_space<vmem>>, vector<2x1xf32>
      %21 = arith.mulf %8, %8 : vector<2x256xf32>
      %cst_15 = arith.constant dense<0.000000e+00> : vector<2xf32>
      %22 = vector.multi_reduction <add>, %21, %cst_15 [1] : vector<2x256xf32> to vector<2xf32>
      %23 = vector.shape_cast %22 : vector<2xf32> to vector<2x1xf32>
      %24 = arith.addf %20, %23 : vector<2x1xf32>
      %c0_16 = arith.constant 0 : index
      %c1_17 = arith.constant 1 : index
      %25 = vector.load %arg8[%c0_16, %c1_17] : memref<16x4xf32, #tpu.memory_space<vmem>>, vector<2x1xf32>
      tpu.vector_store %arg8[%c0_16, %c1_17], %24 {strides = array<i32>} : memref<16x4xf32, #tpu.memory_space<vmem>>, vector<2x1xf32>,
    } else {
    }
    %c1_i32 = arith.constant 1 : i32
    %12 = arith.cmpi eq, %arg0, %c1_i32 : i32
    %13 = arith.extui %12 : i1 to i32
    %c0_i32_8 = arith.constant 0 : i32
    %14 = arith.cmpi ne, %13, %c0_i32_8 : i32
    scf.if %14 {
      %c0_9 = arith.constant 0 : index
      %c0_10 = arith.constant 0 : index
      %15 = vector.load %arg6[%c0_9, %c0_10] : memref<16x8xf32, #tpu.memory_space<vmem>>, vector<2x1xf32>
      %c0_11 = arith.constant 0 : index
      %c1 = arith.constant 1 : index
      %16 = vector.load %arg6[%c0_11, %c1] : memref<16x8xf32, #tpu.memory_space<vmem>>, vector<2x1xf32>
      %c0_12 = arith.constant 0 : index
      %c2 = arith.constant 2 : index
      %17 = vector.load %arg6[%c0_12, %c2] : memref<16x8xf32, #tpu.memory_space<vmem>>, vector<3x1xf32>
      %c0_13 = arith.constant 0 : index
      %c0_14 = arith.constant 0 : index
      %18 = vector.load %arg8[%c0_13, %c0_14] : memref<16x4xf32, #tpu.memory_space<vmem>>, vector<2x1xf32>
      %c0_15 = arith.constant 0 : index
      %c1_16 = arith.constant 1 : index
      %19 = vector.load %arg8[%c0_15, %c1_16] : memref<16x4xf32, #tpu.memory_space<vmem>>, vector<2x1xf32>
      %cst_17 = arith.constant 0.001953125 : f32
      %20 = vector.broadcast %cst_17 : f32 to vector<2x1xf32>
      %21 = arith.mulf %18, %20 : vector<2x1xf32>
      %cst_18 = arith.constant 0.001953125 : f32
      %22 = vector.broadcast %cst_18 : f32 to vector<2x1xf32>
      %23 = arith.mulf %19, %22 : vector<2x1xf32>
      %24 = arith.mulf %21, %21 : vector<2x1xf32>
      %25 = arith.subf %23, %24 : vector<2x1xf32>
      %cst_19 = arith.constant 0.000000e+00 : f32
      %26 = vector.broadcast %cst_19 : f32 to vector<2x1xf32>
      %27 = arith.maximumf %25, %26 : vector<2x1xf32>
      %cst_20 = arith.constant 9.99999974E-6 : f32
      %28 = vector.broadcast %cst_20 : f32 to vector<2x1xf32>
      %29 = arith.addf %27, %28 : vector<2x1xf32>
      %30 = math.rsqrt %29 : vector<2x1xf32>
      %31 = arith.mulf %30, %15 : vector<2x1xf32>
      %32 = vector.broadcast %21 : vector<2x1xf32> to vector<2x256xf32>
      %33 = arith.subf %8, %32 : vector<2x256xf32>
      %34 = vector.broadcast %31 : vector<2x1xf32> to vector<2x256xf32>
      %35 = arith.mulf %33, %34 : vector<2x256xf32>
      %36 = vector.broadcast %16 : vector<2x1xf32> to vector<2x256xf32>
      %37 = arith.addf %35, %36 : vector<2x256xf32>
      %cst_21 = arith.constant 0.000000e+00 : f32
      %38 = vector.broadcast %cst_21 : f32 to vector<2x256xf32>
      %39 = arith.maximumf %37, %38 : vector<2x256xf32>
      %c0_22 = arith.constant 0 : index
      %c0_23 = arith.constant 0 : index
      %40 = vector.load %arg4[%c0_22, %c0_23] : memref<3x2xf32, #tpu.memory_space<vmem>>, vector<3x2xf32>
      %c0_24 = arith.constant 0 : index
      %c0_25 = arith.constant 0 : index
      %41 = vector.load %arg5[%c0_24, %c0_25] : memref<16x27xf32, #tpu.memory_space<vmem>>, vector<16x27xf32>
      %c0_26 = arith.constant 0 : index
      %c0_27 = arith.constant 0 : index
      %42 = vector.load %arg7[%c0_26, %c0_27] : memref<4x256xf32, #tpu.memory_space<vmem>>, vector<4x256xf32>
      %cst_28 = arith.constant dense<0.000000e+00> : vector<3x256xf32>
      %43 = tpu.matmul %40, %39, %cst_28 {dimension_numbers = #tpu.dot_dimension_numbers<[1], [0], [0], [1], [0, 0, 1, 1], [], []>} : vector<3x2xf32>, vector<2x256xf32>, vector<3x256xf32> -> vector<3x256xf32>
      %44 = vector.broadcast %17 : vector<3x1xf32> to vector<3x256xf32>
      %45 = arith.addf %43, %44 : vector<3x256xf32>
      %46 = vector.extract_strided_slice %42 {offsets = [0, 0], sizes = [1, 256], strides = [1, 1]} : vector<4x256xf32> to vector<1x256xf32>
      %47 = vector.extract_strided_slice %42 {offsets = [1, 0], sizes = [1, 256], strides = [1, 1]} : vector<4x256xf32> to vector<1x256xf32>
      %48 = vector.extract_strided_slice %42 {offsets = [2, 0], sizes = [1, 256], strides = [1, 1]} : vector<4x256xf32> to vector<1x256xf32>
      %49 = vector.extract_strided_slice %42 {offsets = [3, 0], sizes = [1, 256], strides = [1, 1]} : vector<4x256xf32> to vector<1x256xf32>
      %c17_i32 = arith.constant 17 : i32
      %50 = tpu.dynamic_rotate %45 by %c17_i32 dim 1 : vector<3x256xf32>, i32 -> vector<3x256xf32>
      %51 = vector.broadcast %46 : vector<1x256xf32> to vector<3x256xf32>
      %52 = arith.mulf %50, %51 : vector<3x256xf32>
      %53 = vector.broadcast %48 : vector<1x256xf32> to vector<3x256xf32>
      %54 = arith.mulf %52, %53 : vector<3x256xf32>
      %55 = vector.extract_strided_slice %41 {offsets = [0, 0], sizes = [16, 3], strides = [1, 1]} : vector<16x27xf32> to vector<16x3xf32>
      %cst_29 = arith.constant dense<0.000000e+00> : vector<16x256xf32>
      %56 = tpu.matmul %55, %54, %cst_29 {dimension_numbers = #tpu.dot_dimension_numbers<[1], [0], [0], [1], [0, 0, 1, 1], [], []>} : vector<16x3xf32>, vector<3x256xf32>, vector<16x256xf32> -> vector<16x256xf32>
      %c16_i32 = arith.constant 16 : i32
      %57 = tpu.dynamic_rotate %45 by %c16_i32 dim 1 : vector<3x256xf32>, i32 -> vector<3x256xf32>
      %58 = vector.broadcast %46 : vector<1x256xf32> to vector<3x256xf32>
      %59 = arith.mulf %57, %58 : vector<3x256xf32>
      %60 = vector.extract_strided_slice %41 {offsets = [0, 3], sizes = [16, 3], strides = [1, 1]} : vector<16x27xf32> to vector<16x3xf32>
      %cst_30 = arith.constant dense<0.000000e+00> : vector<16x256xf32>
      %61 = tpu.matmul %60, %59, %cst_30 {dimension_numbers = #tpu.dot_dimension_numbers<[1], [0], [0], [1], [0, 0, 1, 1], [], []>} : vector<16x3xf32>, vector<3x256xf32>, vector<16x256xf32> -> vector<16x256xf32>
      %62 = arith.addf %56, %61 : vector<16x256xf32>
      %c15_i32 = arith.constant 15 : i32
      %63 = tpu.dynamic_rotate %45 by %c15_i32 dim 1 : vector<3x256xf32>, i32 -> vector<3x256xf32>
      %64 = vector.broadcast %46 : vector<1x256xf32> to vector<3x256xf32>
      %65 = arith.mulf %63, %64 : vector<3x256xf32>
      %66 = vector.broadcast %49 : vector<1x256xf32> to vector<3x256xf32>
      %67 = arith.mulf %65, %66 : vector<3x256xf32>
      %68 = vector.extract_strided_slice %41 {offsets = [0, 6], sizes = [16, 3], strides = [1, 1]} : vector<16x27xf32> to vector<16x3xf32>
      %cst_31 = arith.constant dense<0.000000e+00> : vector<16x256xf32>
      %69 = tpu.matmul %68, %67, %cst_31 {dimension_numbers = #tpu.dot_dimension_numbers<[1], [0], [0], [1], [0, 0, 1, 1], [], []>} : vector<16x3xf32>, vector<3x256xf32>, vector<16x256xf32> -> vector<16x256xf32>
      %70 = arith.addf %62, %69 : vector<16x256xf32>
      %c1_i32_32 = arith.constant 1 : i32
      %71 = tpu.dynamic_rotate %45 by %c1_i32_32 dim 1 : vector<3x256xf32>, i32 -> vector<3x256xf32>
      %72 = vector.broadcast %48 : vector<1x256xf32> to vector<3x256xf32>
      %73 = arith.mulf %71, %72 : vector<3x256xf32>
      %74 = vector.extract_strided_slice %41 {offsets = [0, 9], sizes = [16, 3], strides = [1, 1]} : vector<16x27xf32> to vector<16x3xf32>
      %cst_33 = arith.constant dense<0.000000e+00> : vector<16x256xf32>
      %75 = tpu.matmul %74, %73, %cst_33 {dimension_numbers = #tpu.dot_dimension_numbers<[1], [0], [0], [1], [0, 0, 1, 1], [], []>} : vector<16x3xf32>, vector<3x256xf32>, vector<16x256xf32> -> vector<16x256xf32>
      %76 = arith.addf %70, %75 : vector<16x256xf32>
      %77 = vector.extract_strided_slice %41 {offsets = [0, 12], sizes = [16, 3], strides = [1, 1]} : vector<16x27xf32> to vector<16x3xf32>
      %cst_34 = arith.constant dense<0.000000e+00> : vector<16x256xf32>
      %78 = tpu.matmul %77, %45, %cst_34 {dimension_numbers = #tpu.dot_dimension_numbers<[1], [0], [0], [1], [0, 0, 1, 1], [], []>} : vector<16x3xf32>, vector<3x256xf32>, vector<16x256xf32> -> vector<16x256xf32>
      %79 = arith.addf %76, %78 : vector<16x256xf32>
      %c255_i32 = arith.constant 255 : i32
      %80 = tpu.dynamic_rotate %45 by %c255_i32 dim 1 : vector<3x256xf32>, i32 -> vector<3x256xf32>
      %81 = vector.broadcast %49 : vector<1x256xf32> to vector<3x256xf32>
      %82 = arith.mulf %80, %81 : vector<3x256xf32>
      %83 = vector.extract_strided_slice %41 {offsets = [0, 15], sizes = [16, 3], strides = [1, 1]} : vector<16x27xf32> to vector<16x3xf32>
      %cst_35 = arith.constant dense<0.000000e+00> : vector<16x256xf32>
      %84 = tpu.matmul %83, %82, %cst_35 {dimension_numbers = #tpu.dot_dimension_numbers<[1], [0], [0], [1], [0, 0, 1, 1], [], []>} : vector<16x3xf32>, vector<3x256xf32>, vector<16x256xf32> -> vector<16x256xf32>
      %85 = arith.addf %79, %84 : vector<16x256xf32>
      %c241_i32 = arith.constant 241 : i32
      %86 = tpu.dynamic_rotate %45 by %c241_i32 dim 1 : vector<3x256xf32>, i32 -> vector<3x256xf32>
      %87 = vector.broadcast %47 : vector<1x256xf32> to vector<3x256xf32>
      %88 = arith.mulf %86, %87 : vector<3x256xf32>
      %89 = vector.broadcast %48 : vector<1x256xf32> to vector<3x256xf32>
      %90 = arith.mulf %88, %89 : vector<3x256xf32>
      %91 = vector.extract_strided_slice %41 {offsets = [0, 18], sizes = [16, 3], strides = [1, 1]} : vector<16x27xf32> to vector<16x3xf32>
      %cst_36 = arith.constant dense<0.000000e+00> : vector<16x256xf32>
      %92 = tpu.matmul %91, %90, %cst_36 {dimension_numbers = #tpu.dot_dimension_numbers<[1], [0], [0], [1], [0, 0, 1, 1], [], []>} : vector<16x3xf32>, vector<3x256xf32>, vector<16x256xf32> -> vector<16x256xf32>
      %93 = arith.addf %85, %92 : vector<16x256xf32>
      %c240_i32 = arith.constant 240 : i32
      %94 = tpu.dynamic_rotate %45 by %c240_i32 dim 1 : vector<3x256xf32>, i32 -> vector<3x256xf32>
      %95 = vector.broadcast %47 : vector<1x256xf32> to vector<3x256xf32>
      %96 = arith.mulf %94, %95 : vector<3x256xf32>
      %97 = vector.extract_strided_slice %41 {offsets = [0, 21], sizes = [16, 3], strides = [1, 1]} : vector<16x27xf32> to vector<16x3xf32>
      %cst_37 = arith.constant dense<0.000000e+00> : vector<16x256xf32>
      %98 = tpu.matmul %97, %96, %cst_37 {dimension_numbers = #tpu.dot_dimension_numbers<[1], [0], [0], [1], [0, 0, 1, 1], [], []>} : vector<16x3xf32>, vector<3x256xf32>, vector<16x256xf32> -> vector<16x256xf32>
      %99 = arith.addf %93, %98 : vector<16x256xf32>
      %c239_i32 = arith.constant 239 : i32
      %100 = tpu.dynamic_rotate %45 by %c239_i32 dim 1 : vector<3x256xf32>, i32 -> vector<3x256xf32>
      %101 = vector.broadcast %47 : vector<1x256xf32> to vector<3x256xf32>
      %102 = arith.mulf %100, %101 : vector<3x256xf32>
      %103 = vector.broadcast %49 : vector<1x256xf32> to vector<3x256xf32>
      %104 = arith.mulf %102, %103 : vector<3x256xf32>
      %105 = vector.extract_strided_slice %41 {offsets = [0, 24], sizes = [16, 3], strides = [1, 1]} : vector<16x27xf32> to vector<16x3xf32>
      %cst_38 = arith.constant dense<0.000000e+00> : vector<16x256xf32>
      %106 = tpu.matmul %105, %104, %cst_38 {dimension_numbers = #tpu.dot_dimension_numbers<[1], [0], [0], [1], [0, 0, 1, 1], [], []>} : vector<16x3xf32>, vector<3x256xf32>, vector<16x256xf32> -> vector<16x256xf32>
      %107 = arith.addf %99, %106 : vector<16x256xf32>
      %c0_39 = arith.constant 0 : index
      %c2_40 = arith.constant 2 : index
      %108 = vector.load %arg8[%c0_39, %c2_40] : memref<16x4xf32, #tpu.memory_space<vmem>>, vector<16x1xf32>
      %cst_41 = arith.constant dense<0.000000e+00> : vector<16xf32>
      %109 = vector.multi_reduction <add>, %107, %cst_41 [1] : vector<16x256xf32> to vector<16xf32>
      %110 = vector.shape_cast %109 : vector<16xf32> to vector<16x1xf32>
      %111 = arith.addf %108, %110 : vector<16x1xf32>
      %c0_42 = arith.constant 0 : index
      %c2_43 = arith.constant 2 : index
      %112 = vector.load %arg8[%c0_42, %c2_43] : memref<16x4xf32, #tpu.memory_space<vmem>>, vector<16x1xf32>
      tpu.vector_store %arg8[%c0_42, %c2_43], %111 {strides = array<i32>} : memref<16x4xf32, #tpu.memory_space<vmem>>, vector<16x1xf32>,
      %c0_44 = arith.constant 0 : index
      %c3 = arith.constant 3 : index
      %113 = vector.load %arg8[%c0_44, %c3] : memref<16x4xf32, #tpu.memory_space<vmem>>, vector<16x1xf32>
      %114 = arith.mulf %107, %107 : vector<16x256xf32>
      %cst_45 = arith.constant dense<0.000000e+00> : vector<16xf32>
      %115 = vector.multi_reduction <add>, %114, %cst_45 [1] : vector<16x256xf32> to vector<16xf32>
      %116 = vector.shape_cast %115 : vector<16xf32> to vector<16x1xf32>
      %117 = arith.addf %113, %116 : vector<16x1xf32>
      %c0_46 = arith.constant 0 : index
      %c3_47 = arith.constant 3 : index
      %118 = vector.load %arg8[%c0_46, %c3_47] : memref<16x4xf32, #tpu.memory_space<vmem>>, vector<16x1xf32>
      tpu.vector_store %arg8[%c0_46, %c3_47], %117 {strides = array<i32>} : memref<16x4xf32, #tpu.memory_space<vmem>>, vector<16x1xf32>,
    } else {
    }
    return
  }
  func.func @transform_0(%arg0: i32, %arg1: i32) -> (i32, i32, i32) {
    %c0_i32 = arith.constant 0 : i32
    %c0_i32_0 = arith.constant 0 : i32
    %c0_i32_1 = arith.constant 0 : i32
    return %arg1, %c0_i32, %c0_i32_0 : i32, i32, i32
  }
  func.func @transform_1(%arg0: i32, %arg1: i32) -> (i32, i32) {
    %c0_i32 = arith.constant 0 : i32
    %c0_i32_0 = arith.constant 0 : i32
    %c0_i32_1 = arith.constant 0 : i32
    return %c0_i32, %c0_i32_0 : i32, i32
  }
  func.func @transform_2(%arg0: i32, %arg1: i32) -> (i32, i32) {
    %c0_i32 = arith.constant 0 : i32
    %c0_i32_0 = arith.constant 0 : i32
    %c0_i32_1 = arith.constant 0 : i32
    return %c0_i32, %c0_i32_0 : i32, i32
  }
  func.func @transform_3(%arg0: i32, %arg1: i32) -> (i32, i32) {
    %c0_i32 = arith.constant 0 : i32
    %c0_i32_0 = arith.constant 0 : i32
    %c0_i32_1 = arith.constant 0 : i32
    return %c0_i32, %c0_i32_0 : i32, i32
  }
  func.func @transform_4(%arg0: i32, %arg1: i32) -> (i32, i32) {
    %c0_i32 = arith.constant 0 : i32
    %c0_i32_0 = arith.constant 0 : i32
    %c0_i32_1 = arith.constant 0 : i32
    return %c0_i32, %c0_i32_0 : i32, i32
  }
  func.func @transform_5(%arg0: i32, %arg1: i32) -> (i32, i32) {
    %c0_i32 = arith.constant 0 : i32
    %c0_i32_0 = arith.constant 0 : i32
    %c0_i32_1 = arith.constant 0 : i32
    return %c0_i32, %c0_i32_0 : i32, i32
  }
  func.func @transform_6(%arg0: i32, %arg1: i32) -> (i32, i32) {
    %c0_i32 = arith.constant 0 : i32
    %c0_i32_0 = arith.constant 0 : i32
    %c0_i32_1 = arith.constant 0 : i32
    return %c0_i32, %c0_i32_0 : i32, i32
  }
}

module attributes {stable_mosaic.version = 11 : i64} {
  func.func @_apply_kernel(%arg0: i32, %arg1: memref<1x4x256xf32, #tpu.memory_space<vmem>>, %arg2: memref<2x4xf32, #tpu.memory_space<vmem>>, %arg3: memref<3x2xf32, #tpu.memory_space<vmem>>, %arg4: memref<16x27xf32, #tpu.memory_space<vmem>>, %arg5: memref<16x8xf32, #tpu.memory_space<vmem>>, %arg6: memref<4x256xf32, #tpu.memory_space<vmem>>, %arg7: memref<16x4xf32, #tpu.memory_space<vmem>>, %arg8: memref<1x1x256xf32, #tpu.memory_space<vmem>>) attributes {dimension_semantics = [#tpu.dimension_semantics<parallel>], iteration_bounds = array<i64: 2>, scalar_prefetch = 0 : i64, scratch_operands = 0 : i64, tpu.core_type = #tpu.core_type<tc>, window_params = [{transform_indices = @transform_0, window_bounds = array<i64: 1, 4, 256>}, {pipeline_mode = #tpu.pipeline_mode<synchronous>, transform_indices = @transform_1, window_bounds = array<i64: 2, 4>}, {pipeline_mode = #tpu.pipeline_mode<synchronous>, transform_indices = @transform_2, window_bounds = array<i64: 3, 2>}, {pipeline_mode = #tpu.pipeline_mode<synchronous>, transform_indices = @transform_3, window_bounds = array<i64: 16, 27>}, {pipeline_mode = #tpu.pipeline_mode<synchronous>, transform_indices = @transform_4, window_bounds = array<i64: 16, 8>}, {pipeline_mode = #tpu.pipeline_mode<synchronous>, transform_indices = @transform_5, window_bounds = array<i64: 4, 256>}, {pipeline_mode = #tpu.pipeline_mode<synchronous>, transform_indices = @transform_6, window_bounds = array<i64: 16, 4>}, {transform_indices = @transform_7, window_bounds = array<i64: 1, 1, 256>}]} {
    %c0 = arith.constant 0 : index
    %c0_0 = arith.constant 0 : index
    %c0_1 = arith.constant 0 : index
    %0 = vector.load %arg1[%c0, %c0_0, %c0_1] : memref<1x4x256xf32, #tpu.memory_space<vmem>>, vector<1x4x256xf32>
    %1 = vector.shape_cast %0 : vector<1x4x256xf32> to vector<4x256xf32>
    %c0_2 = arith.constant 0 : index
    %c0_3 = arith.constant 0 : index
    %2 = vector.load %arg2[%c0_2, %c0_3] : memref<2x4xf32, #tpu.memory_space<vmem>>, vector<2x4xf32>
    %cst = arith.constant dense<0.000000e+00> : vector<2x256xf32>
    %3 = tpu.matmul %2, %1, %cst {dimension_numbers = #tpu.dot_dimension_numbers<[1], [0], [0], [1], [0, 0, 1, 1], [], []>} : vector<2x4xf32>, vector<4x256xf32>, vector<2x256xf32> -> vector<2x256xf32>
    %c0_4 = arith.constant 0 : index
    %c0_5 = arith.constant 0 : index
    %4 = vector.load %arg5[%c0_4, %c0_5] : memref<16x8xf32, #tpu.memory_space<vmem>>, vector<2x1xf32>
    %c0_6 = arith.constant 0 : index
    %c1 = arith.constant 1 : index
    %5 = vector.load %arg5[%c0_6, %c1] : memref<16x8xf32, #tpu.memory_space<vmem>>, vector<2x1xf32>
    %c0_7 = arith.constant 0 : index
    %c2 = arith.constant 2 : index
    %6 = vector.load %arg5[%c0_7, %c2] : memref<16x8xf32, #tpu.memory_space<vmem>>, vector<3x1xf32>
    %c0_8 = arith.constant 0 : index
    %c0_9 = arith.constant 0 : index
    %7 = vector.load %arg7[%c0_8, %c0_9] : memref<16x4xf32, #tpu.memory_space<vmem>>, vector<2x1xf32>
    %c0_10 = arith.constant 0 : index
    %c1_11 = arith.constant 1 : index
    %8 = vector.load %arg7[%c0_10, %c1_11] : memref<16x4xf32, #tpu.memory_space<vmem>>, vector<2x1xf32>
    %cst_12 = arith.constant 0.001953125 : f32
    %9 = vector.broadcast %cst_12 : f32 to vector<2x1xf32>
    %10 = arith.mulf %7, %9 : vector<2x1xf32>
    %cst_13 = arith.constant 0.001953125 : f32
    %11 = vector.broadcast %cst_13 : f32 to vector<2x1xf32>
    %12 = arith.mulf %8, %11 : vector<2x1xf32>
    %13 = arith.mulf %10, %10 : vector<2x1xf32>
    %14 = arith.subf %12, %13 : vector<2x1xf32>
    %cst_14 = arith.constant 0.000000e+00 : f32
    %15 = vector.broadcast %cst_14 : f32 to vector<2x1xf32>
    %16 = arith.maximumf %14, %15 : vector<2x1xf32>
    %cst_15 = arith.constant 9.99999974E-6 : f32
    %17 = vector.broadcast %cst_15 : f32 to vector<2x1xf32>
    %18 = arith.addf %16, %17 : vector<2x1xf32>
    %19 = math.rsqrt %18 : vector<2x1xf32>
    %20 = arith.mulf %19, %4 : vector<2x1xf32>
    %21 = vector.broadcast %10 : vector<2x1xf32> to vector<2x256xf32>
    %22 = arith.subf %3, %21 : vector<2x256xf32>
    %23 = vector.broadcast %20 : vector<2x1xf32> to vector<2x256xf32>
    %24 = arith.mulf %22, %23 : vector<2x256xf32>
    %25 = vector.broadcast %5 : vector<2x1xf32> to vector<2x256xf32>
    %26 = arith.addf %24, %25 : vector<2x256xf32>
    %cst_16 = arith.constant 0.000000e+00 : f32
    %27 = vector.broadcast %cst_16 : f32 to vector<2x256xf32>
    %28 = arith.maximumf %26, %27 : vector<2x256xf32>
    %c0_17 = arith.constant 0 : index
    %c0_18 = arith.constant 0 : index
    %29 = vector.load %arg3[%c0_17, %c0_18] : memref<3x2xf32, #tpu.memory_space<vmem>>, vector<3x2xf32>
    %c0_19 = arith.constant 0 : index
    %c0_20 = arith.constant 0 : index
    %30 = vector.load %arg4[%c0_19, %c0_20] : memref<16x27xf32, #tpu.memory_space<vmem>>, vector<16x27xf32>
    %c0_21 = arith.constant 0 : index
    %c0_22 = arith.constant 0 : index
    %31 = vector.load %arg6[%c0_21, %c0_22] : memref<4x256xf32, #tpu.memory_space<vmem>>, vector<4x256xf32>
    %cst_23 = arith.constant dense<0.000000e+00> : vector<3x256xf32>
    %32 = tpu.matmul %29, %28, %cst_23 {dimension_numbers = #tpu.dot_dimension_numbers<[1], [0], [0], [1], [0, 0, 1, 1], [], []>} : vector<3x2xf32>, vector<2x256xf32>, vector<3x256xf32> -> vector<3x256xf32>
    %33 = vector.broadcast %6 : vector<3x1xf32> to vector<3x256xf32>
    %34 = arith.addf %32, %33 : vector<3x256xf32>
    %35 = vector.extract_strided_slice %31 {offsets = [0, 0], sizes = [1, 256], strides = [1, 1]} : vector<4x256xf32> to vector<1x256xf32>
    %36 = vector.extract_strided_slice %31 {offsets = [1, 0], sizes = [1, 256], strides = [1, 1]} : vector<4x256xf32> to vector<1x256xf32>
    %37 = vector.extract_strided_slice %31 {offsets = [2, 0], sizes = [1, 256], strides = [1, 1]} : vector<4x256xf32> to vector<1x256xf32>
    %38 = vector.extract_strided_slice %31 {offsets = [3, 0], sizes = [1, 256], strides = [1, 1]} : vector<4x256xf32> to vector<1x256xf32>
    %c17_i32 = arith.constant 17 : i32
    %39 = tpu.dynamic_rotate %34 by %c17_i32 dim 1 : vector<3x256xf32>, i32 -> vector<3x256xf32>
    %40 = vector.broadcast %35 : vector<1x256xf32> to vector<3x256xf32>
    %41 = arith.mulf %39, %40 : vector<3x256xf32>
    %42 = vector.broadcast %37 : vector<1x256xf32> to vector<3x256xf32>
    %43 = arith.mulf %41, %42 : vector<3x256xf32>
    %44 = vector.extract_strided_slice %30 {offsets = [0, 0], sizes = [16, 3], strides = [1, 1]} : vector<16x27xf32> to vector<16x3xf32>
    %cst_24 = arith.constant dense<0.000000e+00> : vector<16x256xf32>
    %45 = tpu.matmul %44, %43, %cst_24 {dimension_numbers = #tpu.dot_dimension_numbers<[1], [0], [0], [1], [0, 0, 1, 1], [], []>} : vector<16x3xf32>, vector<3x256xf32>, vector<16x256xf32> -> vector<16x256xf32>
    %c16_i32 = arith.constant 16 : i32
    %46 = tpu.dynamic_rotate %34 by %c16_i32 dim 1 : vector<3x256xf32>, i32 -> vector<3x256xf32>
    %47 = vector.broadcast %35 : vector<1x256xf32> to vector<3x256xf32>
    %48 = arith.mulf %46, %47 : vector<3x256xf32>
    %49 = vector.extract_strided_slice %30 {offsets = [0, 3], sizes = [16, 3], strides = [1, 1]} : vector<16x27xf32> to vector<16x3xf32>
    %cst_25 = arith.constant dense<0.000000e+00> : vector<16x256xf32>
    %50 = tpu.matmul %49, %48, %cst_25 {dimension_numbers = #tpu.dot_dimension_numbers<[1], [0], [0], [1], [0, 0, 1, 1], [], []>} : vector<16x3xf32>, vector<3x256xf32>, vector<16x256xf32> -> vector<16x256xf32>
    %51 = arith.addf %45, %50 : vector<16x256xf32>
    %c15_i32 = arith.constant 15 : i32
    %52 = tpu.dynamic_rotate %34 by %c15_i32 dim 1 : vector<3x256xf32>, i32 -> vector<3x256xf32>
    %53 = vector.broadcast %35 : vector<1x256xf32> to vector<3x256xf32>
    %54 = arith.mulf %52, %53 : vector<3x256xf32>
    %55 = vector.broadcast %38 : vector<1x256xf32> to vector<3x256xf32>
    %56 = arith.mulf %54, %55 : vector<3x256xf32>
    %57 = vector.extract_strided_slice %30 {offsets = [0, 6], sizes = [16, 3], strides = [1, 1]} : vector<16x27xf32> to vector<16x3xf32>
    %cst_26 = arith.constant dense<0.000000e+00> : vector<16x256xf32>
    %58 = tpu.matmul %57, %56, %cst_26 {dimension_numbers = #tpu.dot_dimension_numbers<[1], [0], [0], [1], [0, 0, 1, 1], [], []>} : vector<16x3xf32>, vector<3x256xf32>, vector<16x256xf32> -> vector<16x256xf32>
    %59 = arith.addf %51, %58 : vector<16x256xf32>
    %c1_i32 = arith.constant 1 : i32
    %60 = tpu.dynamic_rotate %34 by %c1_i32 dim 1 : vector<3x256xf32>, i32 -> vector<3x256xf32>
    %61 = vector.broadcast %37 : vector<1x256xf32> to vector<3x256xf32>
    %62 = arith.mulf %60, %61 : vector<3x256xf32>
    %63 = vector.extract_strided_slice %30 {offsets = [0, 9], sizes = [16, 3], strides = [1, 1]} : vector<16x27xf32> to vector<16x3xf32>
    %cst_27 = arith.constant dense<0.000000e+00> : vector<16x256xf32>
    %64 = tpu.matmul %63, %62, %cst_27 {dimension_numbers = #tpu.dot_dimension_numbers<[1], [0], [0], [1], [0, 0, 1, 1], [], []>} : vector<16x3xf32>, vector<3x256xf32>, vector<16x256xf32> -> vector<16x256xf32>
    %65 = arith.addf %59, %64 : vector<16x256xf32>
    %66 = vector.extract_strided_slice %30 {offsets = [0, 12], sizes = [16, 3], strides = [1, 1]} : vector<16x27xf32> to vector<16x3xf32>
    %cst_28 = arith.constant dense<0.000000e+00> : vector<16x256xf32>
    %67 = tpu.matmul %66, %34, %cst_28 {dimension_numbers = #tpu.dot_dimension_numbers<[1], [0], [0], [1], [0, 0, 1, 1], [], []>} : vector<16x3xf32>, vector<3x256xf32>, vector<16x256xf32> -> vector<16x256xf32>
    %68 = arith.addf %65, %67 : vector<16x256xf32>
    %c255_i32 = arith.constant 255 : i32
    %69 = tpu.dynamic_rotate %34 by %c255_i32 dim 1 : vector<3x256xf32>, i32 -> vector<3x256xf32>
    %70 = vector.broadcast %38 : vector<1x256xf32> to vector<3x256xf32>
    %71 = arith.mulf %69, %70 : vector<3x256xf32>
    %72 = vector.extract_strided_slice %30 {offsets = [0, 15], sizes = [16, 3], strides = [1, 1]} : vector<16x27xf32> to vector<16x3xf32>
    %cst_29 = arith.constant dense<0.000000e+00> : vector<16x256xf32>
    %73 = tpu.matmul %72, %71, %cst_29 {dimension_numbers = #tpu.dot_dimension_numbers<[1], [0], [0], [1], [0, 0, 1, 1], [], []>} : vector<16x3xf32>, vector<3x256xf32>, vector<16x256xf32> -> vector<16x256xf32>
    %74 = arith.addf %68, %73 : vector<16x256xf32>
    %c241_i32 = arith.constant 241 : i32
    %75 = tpu.dynamic_rotate %34 by %c241_i32 dim 1 : vector<3x256xf32>, i32 -> vector<3x256xf32>
    %76 = vector.broadcast %36 : vector<1x256xf32> to vector<3x256xf32>
    %77 = arith.mulf %75, %76 : vector<3x256xf32>
    %78 = vector.broadcast %37 : vector<1x256xf32> to vector<3x256xf32>
    %79 = arith.mulf %77, %78 : vector<3x256xf32>
    %80 = vector.extract_strided_slice %30 {offsets = [0, 18], sizes = [16, 3], strides = [1, 1]} : vector<16x27xf32> to vector<16x3xf32>
    %cst_30 = arith.constant dense<0.000000e+00> : vector<16x256xf32>
    %81 = tpu.matmul %80, %79, %cst_30 {dimension_numbers = #tpu.dot_dimension_numbers<[1], [0], [0], [1], [0, 0, 1, 1], [], []>} : vector<16x3xf32>, vector<3x256xf32>, vector<16x256xf32> -> vector<16x256xf32>
    %82 = arith.addf %74, %81 : vector<16x256xf32>
    %c240_i32 = arith.constant 240 : i32
    %83 = tpu.dynamic_rotate %34 by %c240_i32 dim 1 : vector<3x256xf32>, i32 -> vector<3x256xf32>
    %84 = vector.broadcast %36 : vector<1x256xf32> to vector<3x256xf32>
    %85 = arith.mulf %83, %84 : vector<3x256xf32>
    %86 = vector.extract_strided_slice %30 {offsets = [0, 21], sizes = [16, 3], strides = [1, 1]} : vector<16x27xf32> to vector<16x3xf32>
    %cst_31 = arith.constant dense<0.000000e+00> : vector<16x256xf32>
    %87 = tpu.matmul %86, %85, %cst_31 {dimension_numbers = #tpu.dot_dimension_numbers<[1], [0], [0], [1], [0, 0, 1, 1], [], []>} : vector<16x3xf32>, vector<3x256xf32>, vector<16x256xf32> -> vector<16x256xf32>
    %88 = arith.addf %82, %87 : vector<16x256xf32>
    %c239_i32 = arith.constant 239 : i32
    %89 = tpu.dynamic_rotate %34 by %c239_i32 dim 1 : vector<3x256xf32>, i32 -> vector<3x256xf32>
    %90 = vector.broadcast %36 : vector<1x256xf32> to vector<3x256xf32>
    %91 = arith.mulf %89, %90 : vector<3x256xf32>
    %92 = vector.broadcast %38 : vector<1x256xf32> to vector<3x256xf32>
    %93 = arith.mulf %91, %92 : vector<3x256xf32>
    %94 = vector.extract_strided_slice %30 {offsets = [0, 24], sizes = [16, 3], strides = [1, 1]} : vector<16x27xf32> to vector<16x3xf32>
    %cst_32 = arith.constant dense<0.000000e+00> : vector<16x256xf32>
    %95 = tpu.matmul %94, %93, %cst_32 {dimension_numbers = #tpu.dot_dimension_numbers<[1], [0], [0], [1], [0, 0, 1, 1], [], []>} : vector<16x3xf32>, vector<3x256xf32>, vector<16x256xf32> -> vector<16x256xf32>
    %96 = arith.addf %88, %95 : vector<16x256xf32>
    %c0_33 = arith.constant 0 : index
    %c3 = arith.constant 3 : index
    %97 = vector.load %arg5[%c0_33, %c3] : memref<16x8xf32, #tpu.memory_space<vmem>>, vector<16x1xf32>
    %c0_34 = arith.constant 0 : index
    %c4 = arith.constant 4 : index
    %98 = vector.load %arg5[%c0_34, %c4] : memref<16x8xf32, #tpu.memory_space<vmem>>, vector<16x1xf32>
    %c0_35 = arith.constant 0 : index
    %c2_36 = arith.constant 2 : index
    %99 = vector.load %arg7[%c0_35, %c2_36] : memref<16x4xf32, #tpu.memory_space<vmem>>, vector<16x1xf32>
    %c0_37 = arith.constant 0 : index
    %c3_38 = arith.constant 3 : index
    %100 = vector.load %arg7[%c0_37, %c3_38] : memref<16x4xf32, #tpu.memory_space<vmem>>, vector<16x1xf32>
    %cst_39 = arith.constant 0.001953125 : f32
    %101 = vector.broadcast %cst_39 : f32 to vector<16x1xf32>
    %102 = arith.mulf %99, %101 : vector<16x1xf32>
    %cst_40 = arith.constant 0.001953125 : f32
    %103 = vector.broadcast %cst_40 : f32 to vector<16x1xf32>
    %104 = arith.mulf %100, %103 : vector<16x1xf32>
    %105 = arith.mulf %102, %102 : vector<16x1xf32>
    %106 = arith.subf %104, %105 : vector<16x1xf32>
    %cst_41 = arith.constant 0.000000e+00 : f32
    %107 = vector.broadcast %cst_41 : f32 to vector<16x1xf32>
    %108 = arith.maximumf %106, %107 : vector<16x1xf32>
    %cst_42 = arith.constant 9.99999974E-6 : f32
    %109 = vector.broadcast %cst_42 : f32 to vector<16x1xf32>
    %110 = arith.addf %108, %109 : vector<16x1xf32>
    %111 = math.rsqrt %110 : vector<16x1xf32>
    %112 = arith.mulf %111, %97 : vector<16x1xf32>
    %113 = vector.broadcast %102 : vector<16x1xf32> to vector<16x256xf32>
    %114 = arith.subf %96, %113 : vector<16x256xf32>
    %115 = vector.broadcast %112 : vector<16x1xf32> to vector<16x256xf32>
    %116 = arith.mulf %114, %115 : vector<16x256xf32>
    %117 = vector.broadcast %98 : vector<16x1xf32> to vector<16x256xf32>
    %118 = arith.addf %116, %117 : vector<16x256xf32>
    %cst_43 = arith.constant 0.000000e+00 : f32
    %119 = vector.broadcast %cst_43 : f32 to vector<16x256xf32>
    %120 = arith.maximumf %118, %119 : vector<16x256xf32>
    %c0_44 = arith.constant 0 : index
    %c5 = arith.constant 5 : index
    %121 = vector.load %arg5[%c0_44, %c5] : memref<16x8xf32, #tpu.memory_space<vmem>>, vector<16x1xf32>
    %c0_45 = arith.constant 0 : index
    %c6 = arith.constant 6 : index
    %122 = vector.load %arg5[%c0_45, %c6] : memref<16x8xf32, #tpu.memory_space<vmem>>, vector<1x1xf32>
    %123 = vector.broadcast %121 : vector<16x1xf32> to vector<16x256xf32>
    %124 = arith.mulf %120, %123 : vector<16x256xf32>
    %cst_46 = arith.constant dense<0.000000e+00> : vector<256xf32>
    %125 = vector.multi_reduction <add>, %124, %cst_46 [0] : vector<16x256xf32> to vector<256xf32>
    %126 = vector.shape_cast %125 : vector<256xf32> to vector<1x256xf32>
    %127 = vector.broadcast %122 : vector<1x1xf32> to vector<1x256xf32>
    %128 = arith.addf %126, %127 : vector<1x256xf32>
    %129 = arith.negf %128 : vector<1x256xf32>
    %130 = math.exp %129 : vector<1x256xf32>
    %cst_47 = arith.constant 1.000000e+00 : f32
    %131 = vector.broadcast %cst_47 : f32 to vector<1x256xf32>
    %132 = arith.addf %131, %130 : vector<1x256xf32>
    %133 = arith.divf %131, %132 : vector<1x256xf32>
    %c0_48 = arith.constant 0 : index
    %c0_49 = arith.constant 0 : index
    %c0_50 = arith.constant 0 : index
    %134 = vector.load %arg8[%c0_48, %c0_49, %c0_50] : memref<1x1x256xf32, #tpu.memory_space<vmem>>, vector<1x1x256xf32>
    %135 = vector.shape_cast %134 : vector<1x1x256xf32> to vector<1x256xf32>
    %136 = vector.shape_cast %133 : vector<1x256xf32> to vector<1x1x256xf32>
    tpu.vector_store %arg8[%c0_48, %c0_49, %c0_50], %136 {strides = array<i32>} : memref<1x1x256xf32, #tpu.memory_space<vmem>>, vector<1x1x256xf32>,
    return
  }
  func.func @transform_0(%arg0: i32) -> (i32, i32, i32) {
    %c0_i32 = arith.constant 0 : i32
    %c0_i32_0 = arith.constant 0 : i32
    %c0_i32_1 = arith.constant 0 : i32
    return %arg0, %c0_i32, %c0_i32_0 : i32, i32, i32
  }
  func.func @transform_1(%arg0: i32) -> (i32, i32) {
    %c0_i32 = arith.constant 0 : i32
    %c0_i32_0 = arith.constant 0 : i32
    %c0_i32_1 = arith.constant 0 : i32
    return %c0_i32, %c0_i32_0 : i32, i32
  }
  func.func @transform_2(%arg0: i32) -> (i32, i32) {
    %c0_i32 = arith.constant 0 : i32
    %c0_i32_0 = arith.constant 0 : i32
    %c0_i32_1 = arith.constant 0 : i32
    return %c0_i32, %c0_i32_0 : i32, i32
  }
  func.func @transform_3(%arg0: i32) -> (i32, i32) {
    %c0_i32 = arith.constant 0 : i32
    %c0_i32_0 = arith.constant 0 : i32
    %c0_i32_1 = arith.constant 0 : i32
    return %c0_i32, %c0_i32_0 : i32, i32
  }
  func.func @transform_4(%arg0: i32) -> (i32, i32) {
    %c0_i32 = arith.constant 0 : i32
    %c0_i32_0 = arith.constant 0 : i32
    %c0_i32_1 = arith.constant 0 : i32
    return %c0_i32, %c0_i32_0 : i32, i32
  }
  func.func @transform_5(%arg0: i32) -> (i32, i32) {
    %c0_i32 = arith.constant 0 : i32
    %c0_i32_0 = arith.constant 0 : i32
    %c0_i32_1 = arith.constant 0 : i32
    return %c0_i32, %c0_i32_0 : i32, i32
  }
  func.func @transform_6(%arg0: i32) -> (i32, i32) {
    %c0_i32 = arith.constant 0 : i32
    %c0_i32_0 = arith.constant 0 : i32
    %c0_i32_1 = arith.constant 0 : i32
    return %c0_i32, %c0_i32_0 : i32, i32
  }
  func.func @transform_7(%arg0: i32) -> (i32, i32, i32) {
    %c0_i32 = arith.constant 0 : i32
    %c0_i32_0 = arith.constant 0 : i32
    %c0_i32_1 = arith.constant 0 : i32
    return %arg0, %c0_i32, %c0_i32_0 : i32, i32, i32
  }
}

</mosaic_0001>

<bundles_post_ra>
// kernel: color_attention.3
= control target key start
LH: loop header
LB: loop body
LE: loop exit
PB: predicated region body
PF: predicated region fallthrough
CT: control target
= control target key end

     0   :  { %s1544_s24 = smov 0   ;;  %s1816_s0 = inlined_call_operand.vmem [shape: f32[2,4,256], index: 0, kind: input, shape index: {}]   ;;  %s1817_s1 = inlined_call_operand.vmem [shape: f32[2,4], index: 1, kind: input, shape index: {}]   ;;  %s1818_s2 = inlined_call_operand.vmem [shape: f32[3,2], index: 2, kind: input, shape index: {}]   ;;  %s1819_s3 = inlined_call_operand.vmem [shape: f32[16,27], index: 3, kind: input, shape index: {}]   ;;  %s1820_s4 = inlined_call_operand.vmem [shape: f32[16,8], index: 4, kind: input, shape index: {}]   ;;  %s1821_s5 = inlined_call_operand.vmem [shape: f32[4,256], index: 5, kind: input, shape index: {}]   ;;  %s1822_s6 = inlined_call_operand.vmem [shape: f32[16,4], index: 6, kind: input, shape index: {}]   ;;  %s1823_s7 = inlined_call_operand.vmem [shape: f32[2,1,256], index: 7, kind: output, shape index: {}]  }
   0x1 LB: > { %s1342_s25 = sadd.s32 4294967295, %s1480_s24   ;;  %p1346_p0 = scmp.ge.s32.totalorder %s1480_s24, 1  ;;  %s1480_s24 = sphi %s1544_s24, %s17_s24  }
   0x2   : > { %p237_p1 = scmp.lt.s32.totalorder %s1480_s24, 3 }
   0x4   : > { %p238_p2 = pnand %p1346_p0, %p237_p1 }
   0x5   : > { %s1482_s28 = smov (!%p238_p2), 1   ;;  %p268_p3 = scmp.lt.s32.totalorder (!%p238_p2), %s1342_s25, 1 }
   0x6   : > { %241 = sbr.rel (%p238_p2) target bundleno = 814 (0x32e), region = 48  ;;  %s1486_s20 = smov (!%p238_p2), 119  }
   0x7   : > { %s1487_s21 = smov (!%p238_p2), 125   ;;  %s1488_s22 = smov (!%p238_p2), 122  }
   0x8   : > { %s1489_s27 = smov (!%p238_p2), 116   ;;  %s1490_s29 = smov (!%p238_p2), 113  }
   0x9   : > { %s1491_s30 = smov (!%p238_p2), 16   ;;  %s1493_s9 = smov (!%p238_p2), 112  }
   0xa   : > { %s1494_s10 = smov (!%p238_p2), 15   ;;  %s1496_s14 = smov (!%p238_p2), 110  }
   0xb   : > { %v334_v0 = vld [vmem:[%s1822_s6] sm:$0x3]  ;;  %s1827_s25 = smov (!%p268_p3, %s1342_s25), 1  ;;  %vm287_vm0 = vcmask 1043456   ;;  %vm283_vm1 = vcmask 31744   ;;  %v1483_v8 = vmov 0   ;;  %v445_v62 = vlaneseq }
   0xc   : > { %v335_v1 = vmul.f32 0.001953125, %v334_v0  ;;  %v332_v3 = vld [vmem:[%s1820_s4] sm:$0x3]  ;;  %s1416_s8 = sshll.u32 %s1827_s25, 3  ;;  %1447 = vset.pattern.permute.xlu1 %v1483_v8  ;;  %v1484_v9 = vmov 1   ;;  %v1485_v25 = vmov 2  }
   0xd   : > { %s272_s11 = scalar_lea.vmem %s1816_s0, %s1416_s8  ;;  %v278_v7 = vld [vmem:[%s1817_s1] sm:$0x3]  ;;  %1449 = vset.pattern.permute.xlu2 %v1484_v9  ;;  %v1580_v26 = vld [vmem:[%s1819_s3 + $0x8] sm:$0xff]  ;;  %vm394_vm5 = vcmask 1041408   ;;  %vm390_vm6 = vcmask 15360   ;;  %s1492_s8 = smov 17  }
   0xe   : > { %v336_v2 = vmul.f32 %v335_v1, %v335_v1  ;;  %v277_v4 = vld [vmem:[%s272_s11] sm:$0xff]  ;;  %361 = vperm.xlu1 %1447, %v335_v1   ;;  %374 = vperm.xlu2 %1449, %v332_v3   ;;  %s1495_s11 = smov 107   ;;  %v1119_v50 = vld [vmem:[%s1822_s6 + $0x8] sm:$0xff]  ;;  %s1497_s17 = smov 127   ;;  %v1669_v0 = vand.u32 127, %v445_v62  ;;  %vm487_vm8 = vcmask 1042432  }
   0xf   : > { %280 = vst [vmem:[#allocation1] ss:$2 sm:$0xff] %v277_v4  ;;  %v333_v23 = vld [vmem:[%s1820_s4] sm:$0x7]  ;;  %v1627_v51 = vmul.f32 0.001953125, %v1119_v50  ;;  %s1498_s18 = smov 111  }
  0x10   : > { %338 = vrot.lane.b32.xlu0 %v336_v2, %s1482_s28  ;;  %v1575_v24 = vld [vmem:[%s1819_s3] sm:$0xff]  ;;  %s1499_s19 = smov 104   ;;  %vm471_vm7 = vcmp.lt.s32.totalorder %v1669_v0, 16  ;;  %vm482_vm9 = vcmask 23552   ;;  %vm447_vm10 = vcmp.lt.s32.totalorder %v1669_v0, 17  ;;  %vm600_vm11 = vcmp.lt.s32.totalorder %v1669_v0, 15 }
  0x11   : > { %v381_v40 = vld [vmem:[%s1818_s2] sm:$0x7]  ;;  %v1123_v56 = vmul.f32 %v1627_v51, %v1627_v51  ;;  %vm681_vm12 = vcmp.lt.s32.totalorder %v1669_v0, 1  ;;  %vm818_vm13 = vcmp.lt.s32.totalorder %v1669_v0, 127  ;;  %vm891_vm14 = vcmp.lt.s32.totalorder %v1669_v0, 113 }
  0x12   : > { %v1118_v46 = vld [vmem:[%s1822_s6] sm:$0xff] }
  0x13   : > { %v1614_v47 = vmul.f32 0.001953125, %v1118_v46  ;;  %v1666_v63 = vld [vmem:[%s1821_s5] sm:$0xff] }
  0x14   : > { %v452_v2 = vperm.slane %v1666_v63, 4 }
  0x15   : > { %v1122_v48 = vmul.f32 %v1614_v47, %v1614_v47 }
  0x16   : > { %v281_v5 = vld.sshfl [vmem:[#allocation1] sm:$0xff pattern:$0x75316420]  ;;  %v282_v6 = vld.sshfl [vmem:[#allocation1 + $0x8] sm:$0xff pattern:$0x75316420]  ;;  %1448 = vset.pattern.permute.xlu1 %v1484_v9  ;;  %1450 = vset.pattern.permute.xlu2 %v1485_v25 }
  0x17   : > { %1350 = vmatpush.msk.msra.mxu2 %vm287_vm0, %v281_v5  ;;  %1352 = vmatpush.msk.msra.mxu3 %vm287_vm0, %v282_v6  ;;  %v456_v5 = vperm.slane %v452_v2, 0  ;;  %v895_v2 = vperm.slane %v1666_v63, 5 }
  0x18   : > { %355 = vrot.lane.b32.xlu0 %v332_v3, %s1482_s28  ;;  %1351 = vmatmul.msk.f32.vlgmr.msra.gmra.mxu2 %vm283_vm1, %v278_v7 }
  0x19   : > { %1353 = vmatmul.msk.f32.vlgmr.msra.gmra.mxu3 %vm283_vm1, %v278_v7  ;;  %387 = vperm.xlu2 %1450, %v333_v23  }
  0x20   : > { %686 = vrot.lane.b32.xlu0 %v1575_v24, %s1486_s20 }
  0x21   : > { %478 = vrot.lane.b32.xlu2 %v1575_v24, %s1487_s21 }
  0x29   : > { %480 = vrot.lane.b32.xlu2 %v1580_v26, %s1487_s21 }
  0x31   : > { %613 = vrot.lane.b32.xlu2 %v1575_v24, %s1488_s22 }
  0x39   : > { %615 = vrot.lane.b32.xlu2 %v1580_v26, %s1488_s22 }
  0x41   : > { %750 = vrot.lane.b32.xlu2 %v1575_v24, %s1489_s27 }
  0x49   : > { %752 = vrot.lane.b32.xlu2 %v1580_v26, %s1489_s27 }
  0x68   : > { %v375_v33 = vpop.permute.xlu2 %374 }
  0x73   : > { %v388_v41 = vpop.permute.xlu2 %387 }
  0x7b   : > { %v479_v49 = vpop.permute.xlu2 %478 }
  0x80   : > { %v362_v27 = vpop.permute.xlu1 %361 }
  0x82   : > { %v339_v10 = vpop.permute.xlu0 %338 }
  0x83   : > { %v341_v11 = vsub.f32 %v335_v1, %v339_v10  ;;  %v481_v52 = vpop.permute.xlu2 %480  ;;  %v451_v1 = vperm.slane %v1666_v63, 0 }
  0x85   : > { %v342_v12 = vmax.f32 %v341_v11, 0.0  ;;  %v455_v4 = vperm.slane %v451_v1, 0 }
  0x87   : > { %v343_v13 = vadd.f32 1e-05, %v342_v12  ;;  %v459_v12 = vperm.slane %v1666_v63, 2 }
  0x89   : > { %1460 = vrsqrt.f32 %v343_v13  ;;  %vm350_vm3 = vweird.f32 %v343_v13 }
  0x8a   : > { %v356_v20 = vpop.permute.xlu0 %355 }
  0x8b   : > { %v1636_v53 = vpop.permute.xlu2 %613 }
  0x8f   : > { %v1461_v14 = vpop.eup %1460 }
  0x90   : > { %v345_v15 = vmul.f32 %v1461_v14, %v343_v13  ;;  %vm351_vm2 = vweird.f32 %v1461_v14  ;;  %v460_v13 = vperm.slane %v1666_v63, 6 }
  0x91   : > { %vm352_vm4 = vmor %vm350_vm3, %vm351_vm2  ;;  %vm972_vm2 = vcmp.lt.s32.totalorder %v1669_v0, 112  ;;  %vm1045_vm3 = vcmp.lt.s32.totalorder %v1669_v0, 111 }
  0x92   : > { %v346_v16 = vmul.f32 %v1461_v14, %v345_v15  ;;  %v1661_v61 = vpop.permute.xlu0 %686 }
  0x93   : > { %v1641_v54 = vpop.permute.xlu2 %615 }
  0x94   : > { %v347_v17 = vmul.f32 0.5, %v346_v16  ;;  %v1685_v16 = vperm.slane %v459_v12, 2 }
  0x96   : > { %v348_v18 = vsub.f32 1.5, %v347_v17  ;;  %v1687_v17 = vperm.slane %v460_v13, 2 }
  0x98   : > { %v349_v19 = vmul.f32 %v1461_v14, %v348_v18 }
  0x9a   : > { %v353_v21 = vsel %vm352_vm4, %v1461_v14, %v349_v19 }
  0x9b   : > { %v358_v22 = vmul.f32 %v356_v20, %v353_v21  ;;  %v309_v28 = vpop.f32.mrf.mxu2  ;;  %v1645_v55 = vpop.permute.xlu2 %750 }
  0x9c   : > { %v329_v29 = vpop.f32.mrf.mxu3  ;;  %v364_v30 = vsub.f32 %v309_v28, %v362_v27  ;;  %v606_v28 = vperm.slane %v1666_v63, 7 }
  0x9d   : > { %368 = vperm.xlu1 %1448, %v358_v22   ;;  %v365_v31 = vsub.f32 %v329_v29, %v362_v27  ;;  %v605_v27 = vperm.slane %v1666_v63, 3 }
  0xa3   : > { %v1651_v57 = vpop.permute.xlu2 %752 }
  0xa5   : > { %688 = vrot.lane.b32.xlu1 %v1580_v26, %s1486_s20 }
  0xa6   : > { %1451 = vset.pattern.permute.xlu1 %v1485_v25 }
 0x10f   : > { %v369_v32 = vpop.permute.xlu1 %368 }
 0x110   : > { %v371_v34 = vmul.f32 %v369_v32, %v364_v30  ;;  %v372_v35 = vmul.f32 %v369_v32, %v365_v31 }
 0x112   : > { %v377_v36 = vadd.f32 %v375_v33, %v371_v34  ;;  %v378_v37 = vadd.f32 %v375_v33, %v372_v35  ;;  %v1703_v33 = vperm.slane %v605_v27, 3  ;;  %v1705_v34 = vperm.slane %v606_v28, 3 }
 0x114   : > { %v379_v38 = vmax.f32 %v377_v36, 0.0  ;;  %v380_v39 = vmax.f32 %v378_v37, 0.0 }
 0x116   : > { %1354 = vmatpush.msk.msrb.mxu2 %vm394_vm5, %v379_v38  ;;  %1356 = vmatpush.msk.msrb.mxu3 %vm394_vm5, %v380_v39 }
 0x117   : > { %1355 = vmatmul.msk.f32.vlgmr.msrb.gmra.mxu2 %vm390_vm6, %v381_v40  ;;  %1357 = vmatmul.msk.f32.vlgmr.msrb.gmra.mxu3 %vm390_vm6, %v381_v40  ;;  %v1659_v60 = vpop.permute.xlu1 %688 }
 0x19a   : > { %v418_v42 = vpop.f32.mrf.mxu2  ;;  %v438_v43 = vpop.f32.mrf.mxu3 }
 0x19b   : > { %v1593_v44 = vadd.f32 %v418_v42, %v388_v41  ;;  %v1595_v45 = vadd.f32 %v438_v43, %v388_v41 }
 0x19d   : > { %889 = vrot.lane.b32.xlu2 %v1595_v45, %s1490_s29  ;;  %469 = vrot.lane.b32.xlu1 %v1595_v45, %s1491_s30 }
 0x19e   : > { %467 = vrot.lane.b32.xlu0 %v1593_v44, %s1491_s30  ;;  %s1349_s30 = sshll.u32 %s1827_s25, 1 }
 0x1a5   : > { %443 = vrot.lane.b32.xlu1 %v1595_v45, %s1492_s8  ;;  %968 = vrot.lane.b32.xlu2 %v1593_v44, %s1493_s9 }
 0x1a6   : > { %441 = vrot.lane.b32.xlu0 %v1593_v44, %s1492_s8 }
 0x1ad   : > { %598 = vrot.lane.b32.xlu1 %v1595_v45, %s1494_s10  ;;  %977 = vrot.lane.b32.xlu2 %v1575_v24, %s1495_s11 }
 0x1ae   : > { %596 = vrot.lane.b32.xlu0 %v1593_v44, %s1494_s10  ;;  %s276_s10 = scalar_lea.vmem %s1823_s7, %s1349_s30 }
 0x1b5   : > { %679 = vrot.lane.b32.xlu1 %v1595_v45, %s1482_s28  ;;  %979 = vrot.lane.b32.xlu2 %v1580_v26, %s1495_s11 }
 0x1b6   : > { %677 = vrot.lane.b32.xlu0 %v1593_v44, %s1482_s28 }
 0x1bd   : > { %904 = vrot.lane.b32.xlu1 %v1575_v24, %s1496_s14  ;;  %1126 = vrot.lane.b32.xlu2 %v1122_v48, %s1482_s28 }
 0x1be   : > { %823 = vrot.lane.b32.xlu0 %v1575_v24, %s1490_s29 }
 0x1c5   : > { %816 = vrot.lane.b32.xlu1 %v1595_v45, %s1497_s17  ;;  %1167 = vperm.xlu2 %1450, %v1627_v51  }
 0x1c6   : > { %814 = vrot.lane.b32.xlu0 %v1593_v44, %s1497_s17 }
 0x1cd   : > { %887 = vrot.lane.b32.xlu1 %v1593_v44, %s1490_s29 }
 0x1ce   : > { %825 = vrot.lane.b32.xlu0 %v1580_v26, %s1490_s29 }
 0x1d5   : > { %906 = vrot.lane.b32.xlu1 %v1580_v26, %s1496_s14 }
 0x1d6   : > { %970 = vrot.lane.b32.xlu0 %v1595_v45, %s1493_s9 }
 0x1dd   : > { %1043 = vrot.lane.b32.xlu1 %v1595_v45, %s1498_s18 }
 0x1de   : > { %1041 = vrot.lane.b32.xlu0 %v1593_v44, %s1498_s18 }
 0x1e5   : > { %1054 = vrot.lane.b32.xlu1 %v1580_v26, %s1499_s19 }
 0x1e6   : > { %1052 = vrot.lane.b32.xlu0 %v1575_v24, %s1499_s19 }
 0x1ed   : > { %1162 = vperm.xlu1 %1451, %v1614_v47  }
 0x1ee   : > { %1128 = vrot.lane.b32.xlu0 %v1123_v56, %s1482_s28 }
 0x1f7   : > { %v1655_v58 = vpop.permute.xlu2 %889 }
 0x1ff   : > { %v1657_v59 = vpop.permute.xlu2 %968 }
 0x207   : > { %v1673_v3 = vpop.permute.xlu2 %977 }
 0x20f   : > { %v470_v6 = vpop.permute.xlu1 %469  ;;  %v1680_v14 = vpop.permute.xlu2 %979 }
 0x210   : > { %v468_v7 = vpop.permute.xlu0 %467 }
 0x211   : > { %v472_v8 = vsel %vm471_vm7, %v468_v7, %v470_v6  ;;  %v473_v9 = vsel %vm471_vm7, %v470_v6, %v468_v7  ;;  %v899_v6 = vperm.slane %v895_v2, 1 }
 0x212   : > { %v474_v10 = vmul.f32 %v473_v9, %v455_v4  ;;  %v475_v11 = vmul.f32 %v472_v8, %v456_v5 }
 0x214   : > { %1358 = vmatpush.msk.msra.mxu0 %vm487_vm8, %v474_v10  ;;  %1361 = vmatpush.msk.msra.mxu1 %vm487_vm8, %v475_v11 }
 0x215   : > { %1359 = vmatmul.msk.f32.vlgmr.msra.gmra.mxu0 %vm482_vm9, %v479_v49  ;;  %1362 = vmatmul.msk.f32.vlgmr.msra.gmra.mxu1 %vm482_vm9, %v479_v49 }
 0x217   : > { %v444_v15 = vpop.permute.xlu1 %443  ;;  %v1127_v29 = vpop.permute.xlu2 %1126 }
 0x218   : > { %v442_v18 = vpop.permute.xlu0 %441  ;;  %v1132_v31 = vsub.f32 %v1614_v47, %v1127_v29 }
 0x219   : > { %v448_v19 = vsel %vm447_vm10, %v442_v18, %v444_v15  ;;  %v449_v20 = vsel %vm447_vm10, %v444_v15, %v442_v18 }
 0x21a   : > { %v457_v21 = vmul.f32 %v455_v4, %v449_v20  ;;  %v458_v22 = vmul.f32 %v456_v5, %v448_v19  ;;  %v1134_v39 = vmax.f32 %v1132_v31, 0.0 }
 0x21c   : > { %v465_v23 = vmul.f32 %v1685_v16, %v457_v21  ;;  %v466_v25 = vmul.f32 %v1687_v17, %v458_v22  ;;  %v1136_v42 = vadd.f32 1e-05, %v1134_v39  ;;  %v1500_v22 = vmov 3  }
 0x21d   : > { %1360 = vmatmul.msk.f32.gmra.mxu0 %vm482_vm9, %v481_v52  ;;  %1363 = vmatmul.msk.f32.gmra.mxu1 %vm482_vm9, %v481_v52  ;;  %v1502_v39 = vmov 5  }
 0x21e   : > { %1364 = vmatpush.msk.msra.mxu2 %vm487_vm8, %v465_v23  ;;  %1367 = vmatpush.msk.msra.mxu3 %vm487_vm8, %v466_v25  ;;  %1462 = vrsqrt.f32 %v1136_v42  ;;  %vm1144_vm15 = vweird.f32 %v1136_v42 }
 0x21f   : > { %1365 = vmatmul.msk.f32.vlgmr.msra.gmra.mxu2 %vm482_vm9, %v1575_v24  ;;  %1368 = vmatmul.msk.f32.vlgmr.msra.gmra.mxu3 %vm482_vm9, %v1575_v24  ;;  %v599_v30 = vpop.permute.xlu1 %598 }
 0x220   : > { %v597_v32 = vpop.permute.xlu0 %596  ;;  %1452 = vset.pattern.permute.xlu0 %v1500_v22  ;;  %1453 = vset.pattern.permute.xlu1 %v1500_v22 }
 0x221   : > { %v601_v35 = vsel %vm600_vm11, %v597_v32, %v599_v30  ;;  %v602_v36 = vsel %vm600_vm11, %v599_v30, %v597_v32 }
 0x222   : > { %v603_v37 = vmul.f32 %v602_v36, %v455_v4  ;;  %v604_v38 = vmul.f32 %v601_v35, %v456_v5  ;;  %v1501_v35 = vmov 4  }
 0x223   : > { %1454 = vset.pattern.permute.xlu2 %v1501_v35 }
 0x224   : > { %v611_v40 = vmul.f32 %v1703_v33, %v603_v37  ;;  %v612_v41 = vmul.f32 %v1705_v34, %v604_v38  ;;  %v1463_v49 = vpop.eup %1462 }
 0x225   : > { %v1139_v50 = vmul.f32 %v1463_v49, %v1136_v42  ;;  %vm1145_vm0 = vweird.f32 %v1463_v49  ;;  %v1503_v42 = vmov 6  }
 0x226   : > { %1370 = vmatpush.msk.msrb.mxu0 %vm487_vm8, %v611_v40  ;;  %1373 = vmatpush.msk.msrb.mxu1 %vm487_vm8, %v612_v41  ;;  %vm1146_vm1 = vmor %vm1144_vm15, %vm1145_vm0  ;;  %vm1286_vm15 = vcmp.lt.s32.totalorder %v445_v62, 256 }
 0x227   : > { %1366 = vmatmul.msk.f32.gmra.mxu2 %vm482_vm9, %v1580_v26  ;;  %1369 = vmatmul.msk.f32.gmra.mxu3 %vm482_vm9, %v1580_v26  ;;  %v680_v24 = vpop.permute.xlu1 %679  ;;  %v1140_v56 = vmul.f32 %v1463_v49, %v1139_v50 }
 0x228   : > { %1371 = vmatmul.msk.f32.vlgmr.msrb.gmra.mxu0 %vm482_vm9, %v1636_v53  ;;  %1374 = vmatmul.msk.f32.vlgmr.msrb.gmra.mxu1 %vm482_vm9, %v1636_v53  ;;  %v678_v43 = vpop.permute.xlu0 %677 }
 0x229   : > { %1382 = vmatpush.msk.msra.mxu0 %vm487_vm8, %v1593_v44  ;;  %1385 = vmatpush.msk.msra.mxu1 %vm487_vm8, %v1595_v45  ;;  %v682_v46 = vsel %vm681_vm12, %v678_v43, %v680_v24  ;;  %v683_v47 = vsel %vm681_vm12, %v680_v24, %v678_v43 }
 0x22a   : > { %v684_v48 = vmul.f32 %v683_v47, %v1685_v16  ;;  %v685_v26 = vmul.f32 %v682_v46, %v1687_v17 }
 0x22c   : > { %1376 = vmatpush.msk.msrb.mxu2 %vm487_vm8, %v684_v48  ;;  %1379 = vmatpush.msk.msrb.mxu3 %vm487_vm8, %v685_v26  ;;  %v1206_v26 = vld [vmem:[%s1820_s4] sm:$0x1] }
 0x22f   : > { %1377 = vmatmul.msk.f32.vlgmr.msrb.gmra.mxu2 %vm482_vm9, %v1661_v61  ;;  %1380 = vmatmul.msk.f32.vlgmr.msrb.gmra.mxu3 %vm482_vm9, %v1661_v61  ;;  %v905_v44 = vpop.permute.xlu1 %904 }
 0x230   : > { %1372 = vmatmul.msk.f32.gmra.mxu0 %vm482_vm9, %v1641_v54  ;;  %1375 = vmatmul.msk.f32.gmra.mxu1 %vm482_vm9, %v1641_v54  ;;  %v824_v45 = vpop.permute.xlu0 %823  ;;  %v894_v54 = vperm.slane %v1666_v63, 1 }
 0x237   : > { %1378 = vmatmul.msk.f32.gmra.mxu2 %vm482_vm9, %v1659_v60  ;;  %1381 = vmatmul.msk.f32.gmra.mxu3 %vm482_vm9, %v1659_v60  ;;  %v817_v52 = vpop.permute.xlu1 %816  ;;  %v1141_v60 = vmul.f32 0.5, %v1140_v56 }
 0x238   : > { %1383 = vmatmul.msk.f32.vlgmr.msra.gmra.mxu0 %vm482_vm9, %v1645_v55  ;;  %1386 = vmatmul.msk.f32.vlgmr.msra.gmra.mxu1 %vm482_vm9, %v1645_v55  ;;  %v815_v53 = vpop.permute.xlu0 %814  ;;  %v898_v55 = vperm.slane %v894_v54, 1 }
 0x239   : > { %v819_v61 = vsel %vm818_vm13, %v815_v53, %v817_v52  ;;  %v820_v1 = vsel %vm818_vm13, %v817_v52, %v815_v53  ;;  %v1142_v10 = vsub.f32 1.5, %v1141_v60 }
 0x23a   : > { %v821_v4 = vmul.f32 %v819_v61, %v1703_v33  ;;  %v822_v5 = vmul.f32 %v820_v1, %v1705_v34 }
 0x23b   : > { %v1143_v18 = vmul.f32 %v1463_v49, %v1142_v10 }
 0x23c   : > { %1388 = vmatpush.msk.msra.mxu2 %vm487_vm8, %v821_v4  ;;  %1391 = vmatpush.msk.msra.mxu3 %vm487_vm8, %v822_v5 }
 0x23f   : > { %1389 = vmatmul.msk.f32.vlgmr.msra.gmra.mxu2 %vm482_vm9, %v824_v45  ;;  %1392 = vmatmul.msk.f32.vlgmr.msra.gmra.mxu3 %vm482_vm9, %v824_v45  ;;  %v888_v7 = vpop.permute.xlu1 %887 }
 0x240   : > { %1384 = vmatmul.msk.f32.gmra.mxu0 %vm482_vm9, %v1651_v57  ;;  %1387 = vmatmul.msk.f32.gmra.mxu1 %vm482_vm9, %v1651_v57  ;;  %v892_v63 = vsel %vm891_vm14, %v888_v7, %v1655_v58  ;;  %v893_v8 = vsel %vm891_vm14, %v1655_v58, %v888_v7  ;;  %v826_v9 = vpop.permute.xlu0 %825  ;;  %v1116_v58 = vld [vmem:[%s1820_s4] sm:$0xff]  ;;  %vm1281_vm14 = vcmask 1040384  }
 0x241   : > { %v900_v11 = vmul.f32 %v898_v55, %v892_v63  ;;  %v901_v12 = vmul.f32 %v899_v6, %v893_v8  ;;  %1190 = vperm.xlu2 %1454, %v1116_v58  }
 0x243   : > { %v902_v13 = vmul.f32 %v900_v11, %v1685_v16  ;;  %v903_v15 = vmul.f32 %v901_v12, %v1687_v17  ;;  %v1147_v16 = vsel %vm1146_vm1, %v1463_v49, %v1143_v18 }
 0x244   : > { %v1158_v19 = vmul.f32 %v1147_v16, %v1116_v58 }
 0x245   : > { %1394 = vmatpush.msk.msrb.mxu0 %vm487_vm8, %v902_v13  ;;  %1397 = vmatpush.msk.msrb.mxu1 %vm487_vm8, %v903_v15 }
 0x246   : > { %1176 = vperm.xlu0 %1452, %v1158_v19  }
 0x247   : > { %1390 = vmatmul.msk.f32.gmra.mxu2 %vm482_vm9, %v826_v9  ;;  %1393 = vmatmul.msk.f32.gmra.mxu3 %vm482_vm9, %v826_v9  ;;  %v907_v57 = vpop.permute.xlu1 %906 }
 0x248   : > { %1395 = vmatmul.msk.f32.vlgmr.msrb.gmra.mxu0 %vm482_vm9, %v905_v44  ;;  %1398 = vmatmul.msk.f32.vlgmr.msrb.gmra.mxu1 %vm482_vm9, %v905_v44  ;;  %v971_v17 = vpop.permute.xlu0 %970 }
 0x249   : > { %v973_v20 = vsel %vm972_vm2, %v1657_v59, %v971_v17  ;;  %v974_v21 = vsel %vm972_vm2, %v971_v17, %v1657_v59  ;;  %1456 = vset.pattern.permute.xlu2 %v1502_v39 }
 0x24a   : > { %v975_v23 = vmul.f32 %v973_v20, %v898_v55  ;;  %v976_v25 = vmul.f32 %v974_v21, %v899_v6  ;;  %1208 = vperm.xlu2 %1456, %v1116_v58  }
 0x24c   : > { %1400 = vmatpush.msk.msrb.mxu2 %vm487_vm8, %v975_v23  ;;  %1403 = vmatpush.msk.msrb.mxu3 %vm487_vm8, %v976_v25 }
 0x24e   : > { %1457 = vset.pattern.permute.xlu0 %v1502_v39 }
 0x24f   : > { %1401 = vmatmul.msk.f32.vlgmr.msrb.gmra.mxu2 %vm482_vm9, %v1673_v3  ;;  %1404 = vmatmul.msk.f32.vlgmr.msrb.gmra.mxu3 %vm482_vm9, %v1673_v3  ;;  %v1044_v27 = vpop.permute.xlu1 %1043 }
 0x250   : > { %1396 = vmatmul.msk.f32.gmra.mxu0 %vm482_vm9, %v907_v57  ;;  %1399 = vmatmul.msk.f32.gmra.mxu1 %vm482_vm9, %v907_v57  ;;  %v1042_v59 = vpop.permute.xlu0 %1041 }
 0x251   : > { %v1046_v28 = vsel %vm1045_vm3, %v1042_v59, %v1044_v27  ;;  %v1047_v29 = vsel %vm1045_vm3, %v1044_v27, %v1042_v59 }
 0x252   : > { %v1048_v30 = vmul.f32 %v1046_v28, %v898_v55  ;;  %v1049_v31 = vmul.f32 %v1047_v29, %v899_v6 }
 0x254   : > { %v1050_v32 = vmul.f32 %v1048_v30, %v1703_v33  ;;  %v1051_v0 = vmul.f32 %v1049_v31, %v1705_v34 }
 0x256   : > { %1406 = vmatpush.msk.msra.mxu0 %vm487_vm8, %v1050_v32  ;;  %1409 = vmatpush.msk.msra.mxu1 %vm487_vm8, %v1051_v0 }
 0x257   : > { %1402 = vmatmul.msk.f32.gmra.mxu2 %vm482_vm9, %v1680_v14  ;;  %1405 = vmatmul.msk.f32.gmra.mxu3 %vm482_vm9, %v1680_v14  ;;  %v1055_v33 = vpop.permute.xlu1 %1054  ;;  %v1117_v14 = vld [vmem:[%s1820_s4 + $0x8] sm:$0xff] }
 0x258   : > { %v1053_v3 = vpop.permute.xlu0 %1052  ;;  %1212 = vperm.xlu0 %1457, %v1117_v14  }
 0x259   : > { %1407 = vmatmul.msk.f32.vlgmr.msra.gmra.mxu0 %vm482_vm9, %v1053_v3  ;;  %1410 = vmatmul.msk.f32.vlgmr.msra.gmra.mxu1 %vm482_vm9, %v1053_v3 }
 0x260   : > { %v1129_v34 = vpop.permute.xlu0 %1128  ;;  %1459 = vset.pattern.permute.xlu0 %v1503_v42 }
 0x261   : > { %v1133_v36 = vsub.f32 %v1627_v51, %v1129_v34  ;;  %1408 = vmatmul.msk.f32.gmra.mxu0 %vm482_vm9, %v1055_v33  ;;  %1411 = vmatmul.msk.f32.gmra.mxu1 %vm482_vm9, %v1055_v33 }
 0x263   : > { %v1135_v37 = vmax.f32 %v1133_v36, 0.0 }
 0x265   : > { %v1137_v38 = vadd.f32 1e-05, %v1135_v37 }
 0x267   : > { %1464 = vrsqrt.f32 %v1137_v38  ;;  %vm1154_vm5 = vweird.f32 %v1137_v38 }
 0x26d   : > { %v1465_v40 = vpop.eup %1464 }
 0x26e   : > { %v1149_v41 = vmul.f32 %v1465_v40, %v1137_v38  ;;  %vm1155_vm4 = vweird.f32 %v1465_v40 }
 0x26f   : > { %vm1156_vm6 = vmor %vm1154_vm5, %vm1155_vm4 }
 0x270   : > { %v1150_v24 = vmul.f32 %v1465_v40, %v1149_v41  ;;  %v1163_v41 = vpop.permute.xlu1 %1162 }
 0x272   : > { %v1151_v51 = vmul.f32 0.5, %v1150_v24  ;;  %v1168_v24 = vpop.permute.xlu2 %1167 }
 0x274   : > { %v1152_v43 = vsub.f32 1.5, %v1151_v51 }
 0x276   : > { %v1153_v46 = vmul.f32 %v1465_v40, %v1152_v43 }
 0x278   : > { %v1157_v47 = vsel %vm1156_vm6, %v1465_v40, %v1153_v46 }
 0x279   : > { %v1159_v48 = vmul.f32 %v1157_v47, %v1117_v14 }
 0x27b   : > { %1181 = vperm.xlu1 %1453, %v1159_v48  }
 0x283   : > { %1455 = vset.pattern.permute.xlu1 %v1501_v35 }
 0x284   : > { %1195 = vperm.xlu1 %1455, %v1117_v14  }
 0x28c   : > { %1458 = vset.pattern.permute.xlu1 %v1503_v42 }
 0x28d   : > { %1235 = vperm.xlu1 %1458, %v1206_v26  }
 0x292   : > { %v511_v44 = vpop.f32.mrf.mxu0  ;;  %v534_v45 = vpop.f32.mrf.mxu1 }
 0x29a   : > { %v514_v49 = vpop.f32.mrf.mxu0  ;;  %v537_v50 = vpop.f32.mrf.mxu1 }
 0x2a2   : > { %v567_v52 = vpop.f32.mrf.mxu2  ;;  %v590_v53 = vpop.f32.mrf.mxu3 }
 0x2a3   : > { %v568_v15 = vadd.f32 %v567_v52, %v511_v44  ;;  %v591_v18 = vadd.f32 %v590_v53, %v534_v45 }
 0x2a5   : > { %v644_v54 = vpop.f32.mrf.mxu0  ;;  %v667_v56 = vpop.f32.mrf.mxu1 }
 0x2a6   : > { %v673_v16 = vadd.f32 %v644_v54, %v568_v15  ;;  %v674_v17 = vadd.f32 %v667_v56, %v591_v18 }
 0x2aa   : > { %v570_v61 = vpop.f32.mrf.mxu2  ;;  %v593_v1 = vpop.f32.mrf.mxu3 }
 0x2ab   : > { %v571_v23 = vadd.f32 %v570_v61, %v514_v49  ;;  %v594_v25 = vadd.f32 %v593_v1, %v537_v50  ;;  %v1191_v1 = vpop.permute.xlu2 %1190 }
 0x2ad   : > { %v647_v2 = vpop.f32.mrf.mxu0  ;;  %v670_v4 = vpop.f32.mrf.mxu1 }
 0x2ae   : > { %v675_v28 = vadd.f32 %v647_v2, %v571_v23  ;;  %v676_v29 = vadd.f32 %v670_v4, %v594_v25 }
 0x2b2   : > { %v717_v5 = vpop.f32.mrf.mxu2  ;;  %v740_v60 = vpop.f32.mrf.mxu3 }
 0x2b3   : > { %v746_v19 = vadd.f32 %v717_v5, %v673_v16  ;;  %v747_v20 = vadd.f32 %v740_v60, %v674_v17  ;;  %v1209_v18 = vpop.permute.xlu2 %1208 }
 0x2b5   : > { %v781_v55 = vpop.f32.mrf.mxu0  ;;  %v804_v6 = vpop.f32.mrf.mxu1 }
 0x2b6   : > { %v810_v27 = vadd.f32 %v781_v55, %v746_v19  ;;  %v811_v59 = vadd.f32 %v804_v6, %v747_v20 }
 0x2b8   : > { %v1177_v50 = vpop.permute.xlu0 %1176 }
 0x2ba   : > { %v720_v7 = vpop.f32.mrf.mxu2  ;;  %v743_v63 = vpop.f32.mrf.mxu3 }
 0x2bb   : > { %v748_v3 = vadd.f32 %v720_v7, %v675_v28  ;;  %v749_v35 = vadd.f32 %v743_v63, %v676_v29 }
 0x2bd   : > { %v784_v8 = vpop.f32.mrf.mxu0  ;;  %v807_v9 = vpop.f32.mrf.mxu1 }
 0x2be   : > { %v812_v38 = vadd.f32 %v784_v8, %v748_v3  ;;  %v813_v14 = vadd.f32 %v807_v9, %v749_v35 }
 0x2c2   : > { %v854_v10 = vpop.f32.mrf.mxu2  ;;  %v877_v11 = vpop.f32.mrf.mxu3 }
 0x2c3   : > { %v883_v30 = vadd.f32 %v854_v10, %v810_v27  ;;  %v884_v31 = vadd.f32 %v877_v11, %v811_v59 }
 0x2c5   : > { %v935_v12 = vpop.f32.mrf.mxu0  ;;  %v958_v13 = vpop.f32.mrf.mxu1 }
 0x2c6   : > { %v964_v36 = vadd.f32 %v935_v12, %v883_v30  ;;  %v965_v37 = vadd.f32 %v958_v13, %v884_v31 }
 0x2ca   : > { %v857_v57 = vpop.f32.mrf.mxu2  ;;  %v880_v58 = vpop.f32.mrf.mxu3 }
 0x2cb   : > { %v885_v51 = vadd.f32 %v857_v57, %v812_v38  ;;  %v886_v42 = vadd.f32 %v880_v58, %v813_v14  ;;  %v1213_v57 = vpop.permute.xlu0 %1212 }
 0x2cd   : > { %v938_v21 = vpop.f32.mrf.mxu0  ;;  %v961_v22 = vpop.f32.mrf.mxu1 }
 0x2ce   : > { %v966_v26 = vadd.f32 %v938_v21, %v885_v51  ;;  %v967_v44 = vadd.f32 %v961_v22, %v886_v42 }
 0x2d2   : > { %v1008_v32 = vpop.f32.mrf.mxu2  ;;  %v1031_v0 = vpop.f32.mrf.mxu3 }
 0x2d3   : > { %v1037_v39 = vadd.f32 %v1008_v32, %v964_v36  ;;  %v1038_v40 = vadd.f32 %v1031_v0, %v965_v37 }
 0x2d6   : > { %v1083_v33 = vpop.f32.mrf.mxu0  ;;  %v1106_v34 = vpop.f32.mrf.mxu1 }
 0x2d7   : > { %v1112_v43 = vadd.f32 %v1083_v33, %v1037_v39  ;;  %v1113_v46 = vadd.f32 %v1106_v34, %v1038_v40 }
 0x2d9   : > { %v1170_v45 = vsub.f32 %v1112_v43, %v1163_v41  ;;  %v1171_v49 = vsub.f32 %v1113_v46, %v1163_v41 }
 0x2da   : > { %v1011_v47 = vpop.f32.mrf.mxu2  ;;  %v1034_v48 = vpop.f32.mrf.mxu3 }
 0x2db   : > { %v1039_v54 = vadd.f32 %v1011_v47, %v966_v26  ;;  %v1040_v56 = vadd.f32 %v1034_v48, %v967_v44  ;;  %v1184_v2 = vmul.f32 %v1177_v50, %v1170_v45  ;;  %v1185_v4 = vmul.f32 %v1177_v50, %v1171_v49 }
 0x2dd   : > { %v1198_v7 = vadd.f32 %v1191_v1, %v1184_v2  ;;  %v1199_v63 = vadd.f32 %v1191_v1, %v1185_v4 }
 0x2de   : > { %v1086_v52 = vpop.f32.mrf.mxu0  ;;  %v1109_v53 = vpop.f32.mrf.mxu1 }
 0x2df   : > { %v1114_v5 = vadd.f32 %v1086_v52, %v1039_v54  ;;  %v1115_v60 = vadd.f32 %v1109_v53, %v1040_v56  ;;  %v1202_v11 = vmax.f32 %v1198_v7, 0.0  ;;  %v1203_v12 = vmax.f32 %v1199_v63, 0.0 }
 0x2e1   : > { %v1172_v55 = vsub.f32 %v1114_v5, %v1168_v24  ;;  %v1173_v6 = vsub.f32 %v1115_v60, %v1168_v24  ;;  %v1215_v17 = vmul.f32 %v1209_v18, %v1202_v11  ;;  %v1216_v19 = vmul.f32 %v1209_v18, %v1203_v12 }
 0x2ed   : > { %v1182_v61 = vpop.permute.xlu1 %1181 }
 0x2ee   : > { %v1186_v8 = vmul.f32 %v1182_v61, %v1172_v55  ;;  %v1187_v9 = vmul.f32 %v1182_v61, %v1173_v6 }
 0x2f6   : > { %v1196_v10 = vpop.permute.xlu1 %1195 }
 0x2f7   : > { %v1200_v13 = vadd.f32 %v1196_v10, %v1186_v8  ;;  %v1201_v15 = vadd.f32 %v1196_v10, %v1187_v9 }
 0x2f9   : > { %v1204_v58 = vmax.f32 %v1200_v13, 0.0  ;;  %v1205_v16 = vmax.f32 %v1201_v15, 0.0 }
 0x2fb   : > { %v1217_v20 = vmul.f32 %v1213_v57, %v1204_v58  ;;  %v1218_v21 = vmul.f32 %v1213_v57, %v1205_v16 }
 0x2fd   : > { %v1219_v22 = vadd.f32 %v1217_v20, %v1215_v17  ;;  %v1226_v23 = vadd.f32 %v1218_v21, %v1216_v19 }
 0x2ff   : > { %v1220_v25 = vrot.slane %v1219_v22, 4  ;;  %v1227_v27 = vrot.slane %v1226_v23, 4  ;;  %v1236_v35 = vpop.permute.xlu1 %1235 }
 0x301   : > { %v1221_v59 = vadd.f32 %v1220_v25, %v1219_v22  ;;  %v1228_v28 = vadd.f32 %v1227_v27, %v1226_v23 }
 0x303   : > { %v1222_v29 = vrot.slane %v1221_v59, 2  ;;  %v1229_v30 = vrot.slane %v1228_v28, 2 }
 0x305   : > { %v1223_v31 = vadd.f32 %v1222_v29, %v1221_v59  ;;  %v1230_v32 = vadd.f32 %v1229_v30, %v1228_v28 }
 0x307   : > { %v1224_v0 = vrot.slane %v1223_v31, 1  ;;  %v1231_v3 = vrot.slane %v1230_v32, 1 }
 0x309   : > { %v1225_v33 = vadd.f32 %v1224_v0, %v1223_v31  ;;  %v1232_v34 = vadd.f32 %v1231_v3, %v1230_v32 }
 0x30b   : > { %v1238_v36 = vadd.f32 %v1236_v35, %v1225_v33  ;;  %v1239_v37 = vadd.f32 %v1236_v35, %v1232_v34 }
 0x30d   : > { %v1412_v38 = vmul.f32 -1.442695, %v1238_v36  ;;  %v1413_v14 = vmul.f32 -1.442695, %v1239_v37 }
 0x30f   : > { %1466 = vpow2.f32 %v1412_v38 }
 0x310   : > { %1468 = vpow2.f32 %v1413_v14 }
 0x315   : > { %v1467_v39 = vpop.eup %1466 }
 0x316   : > { %v1469_v40 = vpop.eup %1468  ;;  %v1246_v41 = vadd.f32 1.0, %v1467_v39 }
 0x317   : > { %v1247_v24 = vadd.f32 1.0, %v1469_v40 }
 0x318   : > { %1470 = vrcp.f32 %v1246_v41  ;;  %vm1253_vm9 = vweird.f32 %v1246_v41  ;;  %v1259_v52 = vand.u32 2147483648, %v1246_v41  ;;  %v1257_v54 = vand.u32 2147483647, %v1246_v41 }
 0x319   : > { %1472 = vrcp.f32 %v1247_v24  ;;  %v1274_v44 = vand.u32 2147483648, %v1247_v24  ;;  %v1272_v49 = vand.u32 2147483647, %v1247_v24  ;;  %vm1268_vm11 = vweird.f32 %v1247_v24 }
 0x31a   : > { %v1260_v4 = vor.u32 1.1754944e-38, %v1259_v52  ;;  %vm1258_vm0 = vcmp.eq.f32.partialorder %v1257_v54, 8.507059e+37 }
 0x31b   : > { %v1275_v61 = vor.u32 1.1754944e-38, %v1274_v44  ;;  %vm1273_vm13 = vcmp.eq.f32.partialorder %v1272_v49, 8.507059e+37 }
 0x31e   : > { %v1471_v51 = vpop.eup %1470 }
 0x31f   : > { %v1473_v42 = vpop.eup %1472  ;;  %v1249_v43 = vmul.f32 %v1471_v51, %v1246_v41  ;;  %vm1254_vm7 = vweird.f32 %v1471_v51 }
 0x320   : > { %v1264_v46 = vmul.f32 %v1473_v42, %v1247_v24  ;;  %vm1269_vm8 = vweird.f32 %v1473_v42  ;;  %vm1802_vm10 = vmor %vm1253_vm9, %vm1254_vm7 }
 0x321   : > { %v1250_v47 = vsub.f32 1.0, %v1249_v43  ;;  %vm1270_vm12 = vmor %vm1268_vm11, %vm1269_vm8 }
 0x322   : > { %v1265_v48 = vsub.f32 1.0, %v1264_v46 }
 0x323   : > { %v1251_v26 = vmul.f32 %v1471_v51, %v1250_v47 }
 0x324   : > { %v1266_v45 = vmul.f32 %v1473_v42, %v1265_v48 }
 0x325   : > { %v1252_v50 = vadd.f32 %v1471_v51, %v1251_v26 }
 0x326   : > { %v1267_v56 = vadd.f32 %v1473_v42, %v1266_v45 }
 0x327   : > { %v1256_v1 = vsel %vm1802_vm10, %v1471_v51, %v1252_v50 }
 0x328   : > { %v1271_v2 = vsel %vm1270_vm12, %v1473_v42, %v1267_v56  ;;  %v1261_v55 = vsel %vm1258_vm0, %v1260_v4, %v1256_v1 }
 0x329   : > { %v1276_v5 = vsel %vm1273_vm13, %v1275_v61, %v1271_v2 }
 0x32a   : > { %v1280_v60 = vrot.slane %v1276_v5, 7 }
 0x32c   : > { %v1282_v6 = vsel %vm1281_vm14, %v1261_v55, %v1280_v60 }
 0x32d   : > { %1288 = vst.msk [vmem:[%s276_s10] sm:$0x3] %vm1286_vm15, %v1282_v6 }
 0x32e PF: > { %s17_s24 = sadd.s32 1, %s1480_s24  }
 0x32f   : > { %p14_p4 = scmp.ge.s32.totalorder %s17_s24, 4  }
 0x331   :  { %16 = sbr.rel (!%p14_p4) target bundleno = 1 (0x1), region = 78 }

// kernel: color_attention.2
= control target key start
LH: loop header
LB: loop body
LE: loop exit
PB: predicated region body
PF: predicated region fallthrough
CT: control target
= control target key end

     0   :  { %s1427_s21 = smov 0   ;;  %s1429_s22 = smov 0   ;;  %s1694_s0 = inlined_call_operand.vmem [shape: f32[2,4,256], index: 0, kind: input, shape index: {}]   ;;  %s1695_s1 = inlined_call_operand.vmem [shape: f32[2,4], index: 1, kind: input, shape index: {}]   ;;  %s1696_s2 = inlined_call_operand.vmem [shape: f32[3,2], index: 2, kind: input, shape index: {}]   ;;  %s1697_s3 = inlined_call_operand.vmem [shape: f32[16,27], index: 3, kind: input, shape index: {}]   ;;  %s1698_s4 = inlined_call_operand.vmem [shape: f32[16,8], index: 4, kind: input, shape index: {}]   ;;  %s1699_s5 = inlined_call_operand.vmem [shape: f32[4,256], index: 5, kind: input, shape index: {}]   ;;  %s1700_s6 = inlined_call_operand.vmem [shape: f32[16,4], index: 6, kind: output, shape index: {}]  }
   0x1   :  { %s1431_s23 = smov 0   ;;  %s1433_s24 = smov 0  }
   0x2   :  { %s1435_s25 = smov 0  }
   0x3 LB: > { %s25_s26 = sadd.s32 1, %s1363_s23  ;;  %s28_s27 = sadd.s32 1, %s1367_s24  ;;  %s1371_s25 = sphi %s1435_s25, %s16_s25   ;;  %s1367_s24 = sphi %s1433_s24, %s1704_s24   ;;  %s1363_s23 = sphi %s1431_s23, %s1703_s23   ;;  %s1359_s22 = sphi %s1429_s22, %s1702_s22   ;;  %s1355_s21 = sphi %s1427_s21, %s1701_s21  }
   0x4   : > { %p26_p0 = scmp.ge.s32.totalorder %s25_s26, 2  ;;  %p1197_p1 = scmp.ge.s32.totalorder %s1371_s25, 1 }
   0x5   : > { %p219_p2 = scmp.lt.s32.totalorder %s1371_s25, 5 }
   0x6   : > { %s1706_s26 = smov (%p26_p0, %s25_s26), 0  ;;  %s1708_s27 = smov (!%p26_p0, %s28_s27), %s1367_s24 }
   0x7   : > { %p220_p3 = pnand %p1197_p1, %p219_p2  ;;  %p30_p4 = scmp.ge.s32.totalorder %s1708_s27, 2 }
   0x8   : > { %p244_p5 = scmp.lt.s32.totalorder (!%p220_p3), %s1355_s21, 1  ;;  %p249_p6 = scmp.eq.s32.totalorder (!%p220_p3), %s1359_s22, 0 }
   0x9   : > { %s1710_s27 = smov (%p30_p4, %s1708_s27), 0  ;;  %223 = sbr.rel (%p220_p3) target bundleno = 1155 (0x483), region = 44 }
   0xa   : > { %p250_p7 = scmp.eq.s32.totalorder (!%p220_p3), %s1355_s21, 0 }
   0xc   : > { %p251_p8 = pnand (!%p220_p3), %p250_p7, %p249_p6 }
   0xe   : > { %s1712_s21 = smov (!%p244_p5, %s1355_s21), 1  ;;  %254 = sbr.rel (%p251_p8) target bundleno = 22 (0x16), region = 48 }
   0xf   : > { %s1266_s28 = sshll.u32 %s1712_s21, 3 }
  0x10   : > { %s248_s7 = scalar_lea.vmem %s1694_s0, %s1266_s28 }
  0x13   : > { %vm255_vm0 = vcmask 31744   ;;  %v1373_v0 = vmov 0.0  }
  0x14   : > { %256 = vst.msk [vmem:[%s1700_s6] sm:$0xff] %vm255_vm0, %v1373_v0 }
  0x15   : > { %257 = vst.msk [vmem:[%s1700_s6 + $0x8] sm:$0xff] %vm255_vm0, %v1373_v0 }
  0x16 PF: > { %v258_v1 = vld [vmem:[%s248_s7] sm:$0xff]  ;;  %vm268_vm1 = vcmask 1043456   ;;  %vm264_vm2 = vcmask 31744   ;;  %p1204_p9 = scmp.ne.s32.totalorder %s1359_s22, 0 }
  0x17   : > { %261 = vst [vmem:[#allocation1] ss:$2 sm:$0xff] %v258_v1  ;;  %v259_v2 = vld [vmem:[%s1695_s1] sm:$0x3] }
  0x1e   : > { %v262_v3 = vld.sshfl [vmem:[#allocation1] sm:$0xff pattern:$0x75316420]  ;;  %v263_v4 = vld.sshfl [vmem:[#allocation1 + $0x8] sm:$0xff pattern:$0x75316420] }
  0x1f   : > { %1200 = vmatpush.msk.msra.mxu0 %vm268_vm1, %v262_v3  ;;  %1202 = vmatpush.msk.msra.mxu1 %vm268_vm1, %v263_v4 }
  0x20   : > { %1201 = vmatmul.msk.f32.vlgmr.msra.gmra.mxu0 %vm264_vm2, %v259_v2  ;;  %1203 = vmatmul.msk.f32.vlgmr.msra.gmra.mxu1 %vm264_vm2, %v259_v2 }
  0x99   : > { %315 = sbr.rel (%p1204_p9) target bundleno = 291 (0x123), region = 52 }
  0x9d   : > { %v1472_v5 = vpop.f32.mrf.mxu0  ;;  %v1474_v6 = vpop.f32.mrf.mxu1 }
  0x9e   : > { %vm317_vm3 = vcmask 1041408   ;;  %v327_v9 = vmul.f32 %v1472_v5, %v1472_v5  ;;  %v328_v10 = vmul.f32 %v1474_v6, %v1474_v6  ;;  %v316_v15 = vld [vmem:[%s1700_s6] sm:$0x3]  ;;  %vm324_vm4 = vcmask 1024  }
  0x9f   : > { %v318_v7 = vsel %vm317_vm3, %v1472_v5, 0.0  ;;  %v319_v8 = vsel %vm317_vm3, %v1474_v6, 0.0  ;;  %vm335_vm5 = vcmask 9224  }
  0xa0   : > { %v320_v11 = vadd.f32 %v319_v8, %v318_v7  ;;  %v329_v12 = vsel %vm317_vm3, %v327_v9, 0.0  ;;  %v330_v13 = vsel %vm317_vm3, %v328_v10, 0.0 }
  0xa1   : > { %v331_v14 = vadd.f32 %v330_v13, %v329_v12 }
  0xa2   : > { %321 = vadd.xlane.f32.xlu0 %v320_v11 }
  0xaa   : > { %332 = vadd.xlane.f32.xlu0 %v331_v14 }
 0x115   : > { %v322_v16 = vpop.xlane.xlu0 %321 }
 0x116   : > { %v323_v17 = vadd.f32 %v322_v16, %v316_v15 }
 0x118   : > { %325 = vst.msk [vmem:[%s1700_s6] sm:$0x3] %vm324_vm4, %v323_v17 }
 0x11d   : > { %v333_v18 = vpop.xlane.xlu0 %332 }
 0x11f   : > { %v326_v19 = vld [vmem:[%s1700_s6] sm:$0x3] }
 0x120   : > { %v334_v20 = vadd.f32 %v333_v18, %v326_v19 }
 0x122   : > { %336 = vst.msk [vmem:[%s1700_s6] sm:$0x3] %vm335_vm5, %v334_v20 }
 0x123 PF: > { %p1205_p10 = scmp.ne.s32.totalorder %s1359_s22, 1 }
 0x124   : > { %s1374_s30 = smov (!%p1205_p10), 1   ;;  %s1378_s12 = smov (!%p1205_p10), 125  }
 0x125   : > { %340 = sbr.rel (%p1205_p10) target bundleno = 1155 (0x483), region = 56  ;;  %s1379_s15 = smov (!%p1205_p10), 15  }
 0x126   : > { %s1380_s16 = smov (!%p1205_p10), 16   ;;  %s1381_s19 = smov (!%p1205_p10), 122  }
 0x127   : > { %s1382_s20 = smov (!%p1205_p10), 116   ;;  %s1383_s21 = smov (!%p1205_p10), 17  }
 0x128   : > { %s1384_s28 = smov (!%p1205_p10), 119   ;;  %s1385_s29 = smov (!%p1205_p10), 110  }
 0x129   : > { %s1386_s7 = smov (!%p1205_p10), 113   ;;  %s1387_s8 = smov (!%p1205_p10), 111  }
 0x12a   : > { %v343_v21 = vld [vmem:[%s1700_s6] sm:$0x3]  ;;  %v1375_v25 = vmov 0   ;;  %v1376_v26 = vmov 1   ;;  %v1377_v41 = vmov 2   ;;  %vm403_vm9 = vcmask 1041408  }
 0x12b   : > { %v344_v22 = vmul.f32 0.001953125, %v343_v21  ;;  %v341_v24 = vld [vmem:[%s1698_s4] sm:$0x3]  ;;  %1326 = vset.pattern.permute.xlu1 %v1375_v25  ;;  %1328 = vset.pattern.permute.xlu2 %v1376_v26  ;;  %vm399_vm10 = vcmask 15360   ;;  %v1529_v60 = vld [vmem:[%s1697_s3 + $0x8] sm:$0xff]  ;;  %s1388_s22 = smov 112   ;;  %v454_v62 = vlaneseq }
 0x12c   : > { %383 = vperm.xlu2 %1328, %v341_v24   ;;  %v342_v40 = vld [vmem:[%s1698_s4] sm:$0x7]  ;;  %1330 = vset.pattern.permute.xlu0 %v1377_v41  ;;  %s1390_s9 = smov 107   ;;  %s1391_s10 = smov 104   ;;  %vm496_vm12 = vcmask 1042432   ;;  %vm491_vm13 = vcmask 23552  }
 0x12d   : > { %v345_v23 = vmul.f32 %v344_v22, %v344_v22  ;;  %370 = vperm.xlu1 %1326, %v344_v22   ;;  %v1510_v42 = vld [vmem:[%s1697_s3] sm:$0xff]  ;;  %v1567_v0 = vand.u32 127, %v454_v62  ;;  %vm1135_vm5 = vcmask 23568  }
 0x12e   : > { %v390_v54 = vld [vmem:[%s1696_s2] sm:$0x7] }
 0x12f   : > { %347 = vrot.lane.b32.xlu0 %v345_v23, %s1374_s30  ;;  %v1565_v63 = vld [vmem:[%s1699_s5] sm:$0xff]  ;;  %vm480_vm11 = vcmp.lt.s32.totalorder %v1567_v0, 16  ;;  %vm609_vm14 = vcmp.lt.s32.totalorder %v1567_v0, 15  ;;  %vm456_vm15 = vcmp.lt.s32.totalorder %v1567_v0, 17  ;;  %vm690_vm0 = vcmp.lt.s32.totalorder %v1567_v0, 1 }
 0x130   : > { %v460_v1 = vperm.slane %v1565_v63, 0  ;;  %v461_v2 = vperm.slane %v1565_v63, 4  ;;  %v614_v12 = vperm.slane %v1565_v63, 3  ;;  %v615_v13 = vperm.slane %v1565_v63, 7 }
 0x131   : > { %v468_v25 = vperm.slane %v1565_v63, 2  ;;  %vm900_vm1 = vcmp.lt.s32.totalorder %v1567_v0, 113  ;;  %vm827_vm2 = vcmp.lt.s32.totalorder %v1567_v0, 127  ;;  %vm1054_vm3 = vcmp.lt.s32.totalorder %v1567_v0, 111 }
 0x132   : > { %v464_v4 = vperm.slane %v460_v1, 0  ;;  %v1579_v16 = vperm.slane %v614_v12, 3  ;;  %v1581_v17 = vperm.slane %v615_v13, 3  ;;  %vm981_vm4 = vcmp.lt.s32.totalorder %v1567_v0, 112 }
 0x134   : > { %1329 = vset.pattern.permute.xlu2 %v1377_v41 }
 0x135   : > { %1327 = vset.pattern.permute.xlu1 %v1376_v26  ;;  %396 = vperm.xlu2 %1329, %v342_v40   ;;  %v469_v26 = vperm.slane %v1565_v63, 6 }
 0x137   : > { %364 = vrot.lane.b32.xlu0 %v341_v24, %s1374_s30 }
 0x13d   : > { %487 = vrot.lane.b32.xlu2 %v1510_v42, %s1378_s12 }
 0x186   : > { %v384_v47 = vpop.permute.xlu2 %383 }
 0x18f   : > { %v397_v55 = vpop.permute.xlu2 %396 }
 0x197   : > { %v488_v61 = vpop.permute.xlu2 %487 }
 0x19f   : > { %v371_v43 = vpop.permute.xlu1 %370 }
 0x1a0   : > { %v373_v44 = vsub.f32 %v1472_v5, %v371_v43  ;;  %v374_v45 = vsub.f32 %v1474_v6, %v371_v43  ;;  %v465_v5 = vperm.slane %v461_v2, 0 }
 0x1a1   : > { %v348_v27 = vpop.permute.xlu0 %347 }
 0x1a2   : > { %v350_v28 = vsub.f32 %v344_v22, %v348_v27 }
 0x1a4   : > { %v351_v29 = vmax.f32 %v350_v28, 0.0 }
 0x1a6   : > { %v352_v30 = vadd.f32 1e-05, %v351_v29 }
 0x1a8   : > { %1331 = vrsqrt.f32 %v352_v30  ;;  %vm359_vm7 = vweird.f32 %v352_v30 }
 0x1a9   : > { %v365_v37 = vpop.permute.xlu0 %364 }
 0x1ae   : > { %v1332_v31 = vpop.eup %1331 }
 0x1af   : > { %v354_v32 = vmul.f32 %v1332_v31, %v352_v30  ;;  %vm360_vm6 = vweird.f32 %v1332_v31  ;;  %v472_v30 = vperm.slane %v468_v25, 2 }
 0x1b0   : > { %vm361_vm8 = vmor %vm359_vm7, %vm360_vm6  ;;  %vm1152_vm6 = vcmask 31768  }
 0x1b1   : > { %v355_v33 = vmul.f32 %v1332_v31, %v354_v32 }
 0x1b3   : > { %v356_v34 = vmul.f32 0.5, %v355_v33 }
 0x1b5   : > { %v357_v35 = vsub.f32 1.5, %v356_v34 }
 0x1b7   : > { %v358_v36 = vmul.f32 %v1332_v31, %v357_v35 }
 0x1b9   : > { %v362_v38 = vsel %vm361_vm8, %v1332_v31, %v358_v36  ;;  %v473_v31 = vperm.slane %v469_v26, 2 }
 0x1ba   : > { %v367_v39 = vmul.f32 %v365_v37, %v362_v38 }
 0x1bc   : > { %377 = vperm.xlu1 %1327, %v367_v39  }
 0x22e   : > { %v378_v46 = vpop.permute.xlu1 %377 }
 0x22f   : > { %v380_v48 = vmul.f32 %v378_v46, %v373_v44  ;;  %v381_v49 = vmul.f32 %v378_v46, %v374_v45 }
 0x231   : > { %v386_v50 = vadd.f32 %v384_v47, %v380_v48  ;;  %v387_v51 = vadd.f32 %v384_v47, %v381_v49 }
 0x233   : > { %v388_v52 = vmax.f32 %v386_v50, 0.0  ;;  %v389_v53 = vmax.f32 %v387_v51, 0.0  ;;  %v903_v50 = vperm.slane %v1565_v63, 1  ;;  %v904_v51 = vperm.slane %v1565_v63, 5 }
 0x235   : > { %1206 = vmatpush.msk.msra.mxu0 %vm403_vm9, %v388_v52  ;;  %1208 = vmatpush.msk.msra.mxu1 %vm403_vm9, %v389_v53  ;;  %v907_v53 = vperm.slane %v903_v50, 1 }
 0x236   : > { %1207 = vmatmul.msk.f32.vlgmr.msra.gmra.mxu0 %vm399_vm10, %v390_v54  ;;  %1209 = vmatmul.msk.f32.vlgmr.msra.gmra.mxu1 %vm399_vm10, %v390_v54  ;;  %v908_v54 = vperm.slane %v904_v51, 1 }
 0x2b3   : > { %v427_v56 = vpop.f32.mrf.mxu0  ;;  %v447_v57 = vpop.f32.mrf.mxu1 }
 0x2b4   : > { %v1519_v58 = vadd.f32 %v427_v56, %v397_v55  ;;  %v1521_v59 = vadd.f32 %v447_v57, %v397_v55 }
 0x2b6   : > { %607 = vrot.lane.b32.xlu2 %v1521_v59, %s1379_s15  ;;  %478 = vrot.lane.b32.xlu1 %v1521_v59, %s1380_s16 }
 0x2b7   : > { %476 = vrot.lane.b32.xlu0 %v1519_v58, %s1380_s16 }
 0x2be   : > { %622 = vrot.lane.b32.xlu2 %v1510_v42, %s1381_s19  ;;  %605 = vrot.lane.b32.xlu1 %v1519_v58, %s1379_s15 }
 0x2bf   : > { %489 = vrot.lane.b32.xlu0 %v1529_v60, %s1378_s12 }
 0x2c6   : > { %761 = vrot.lane.b32.xlu2 %v1529_v60, %s1382_s20  ;;  %452 = vrot.lane.b32.xlu1 %v1521_v59, %s1383_s21 }
 0x2c7   : > { %450 = vrot.lane.b32.xlu0 %v1519_v58, %s1383_s21 }
 0x2ce   : > { %688 = vrot.lane.b32.xlu2 %v1521_v59, %s1374_s30  ;;  %695 = vrot.lane.b32.xlu1 %v1510_v42, %s1384_s28 }
 0x2cf   : > { %624 = vrot.lane.b32.xlu0 %v1529_v60, %s1381_s19 }
 0x2d6   : > { %697 = vrot.lane.b32.xlu2 %v1529_v60, %s1384_s28  ;;  %686 = vrot.lane.b32.xlu1 %v1519_v58, %s1374_s30  ;;  %s1389_s30 = smov 127  }
 0x2d7   : > { %759 = vrot.lane.b32.xlu0 %v1510_v42, %s1382_s20 }
 0x2de   : > { %913 = vrot.lane.b32.xlu2 %v1510_v42, %s1385_s29  ;;  %915 = vrot.lane.b32.xlu1 %v1529_v60, %s1385_s29 }
 0x2df   : > { %832 = vrot.lane.b32.xlu0 %v1510_v42, %s1386_s7 }
 0x2e6   : > { %1050 = vrot.lane.b32.xlu2 %v1519_v58, %s1387_s8  ;;  %898 = vrot.lane.b32.xlu1 %v1521_v59, %s1386_s7 }
 0x2e7   : > { %896 = vrot.lane.b32.xlu0 %v1519_v58, %s1386_s7 }
 0x2ee   : > { %977 = vrot.lane.b32.xlu2 %v1519_v58, %s1388_s22  ;;  %825 = vrot.lane.b32.xlu1 %v1521_v59, %s1389_s30 }
 0x2ef   : > { %823 = vrot.lane.b32.xlu0 %v1519_v58, %s1389_s30 }
 0x2f6   : > { %834 = vrot.lane.b32.xlu1 %v1529_v60, %s1386_s7  ;;  %986 = vrot.lane.b32.xlu2 %v1510_v42, %s1390_s9 }
 0x2f7   : > { %1052 = vrot.lane.b32.xlu0 %v1521_v59, %s1387_s8 }
 0x2fe   : > { %1061 = vrot.lane.b32.xlu1 %v1510_v42, %s1391_s10 }
 0x2ff   : > { %979 = vrot.lane.b32.xlu0 %v1521_v59, %s1388_s22 }
 0x306   : > { %988 = vrot.lane.b32.xlu1 %v1529_v60, %s1390_s9 }
 0x307   : > { %1063 = vrot.lane.b32.xlu0 %v1529_v60, %s1391_s10 }
 0x310   : > { %v608_v3 = vpop.permute.xlu2 %607 }
 0x318   : > { %v623_v14 = vpop.permute.xlu2 %622 }
 0x320   : > { %v762_v28 = vpop.permute.xlu2 %761 }
 0x328   : > { %v479_v6 = vpop.permute.xlu1 %478  ;;  %v689_v40 = vpop.permute.xlu2 %688 }
 0x329   : > { %v477_v7 = vpop.permute.xlu0 %476 }
 0x32a   : > { %v481_v8 = vsel %vm480_vm11, %v477_v7, %v479_v6  ;;  %v482_v9 = vsel %vm480_vm11, %v479_v6, %v477_v7 }
 0x32b   : > { %v483_v10 = vmul.f32 %v482_v9, %v464_v4  ;;  %v484_v11 = vmul.f32 %v481_v8, %v465_v5 }
 0x32d   : > { %1210 = vmatpush.msk.msra.mxu2 %vm496_vm12, %v483_v10  ;;  %1213 = vmatpush.msk.msra.mxu3 %vm496_vm12, %v484_v11 }
 0x32e   : > { %1211 = vmatmul.msk.f32.vlgmr.msra.gmra.mxu2 %vm491_vm13, %v488_v61  ;;  %1214 = vmatmul.msk.f32.vlgmr.msra.gmra.mxu3 %vm491_vm13, %v488_v61 }
 0x330   : > { %v606_v15 = vpop.permute.xlu1 %605  ;;  %v698_v47 = vpop.permute.xlu2 %697 }
 0x331   : > { %v610_v18 = vsel %vm609_vm14, %v606_v15, %v608_v3  ;;  %v611_v19 = vsel %vm609_vm14, %v608_v3, %v606_v15  ;;  %v490_v20 = vpop.permute.xlu0 %489 }
 0x332   : > { %v612_v21 = vmul.f32 %v611_v19, %v464_v4  ;;  %v613_v22 = vmul.f32 %v610_v18, %v465_v5 }
 0x334   : > { %v620_v23 = vmul.f32 %v1579_v16, %v612_v21  ;;  %v621_v24 = vmul.f32 %v1581_v17, %v613_v22 }
 0x336   : > { %1212 = vmatmul.msk.f32.gmra.mxu2 %vm491_vm13, %v490_v20  ;;  %1215 = vmatmul.msk.f32.gmra.mxu3 %vm491_vm13, %v490_v20 }
 0x337   : > { %1222 = vmatpush.msk.msrb.mxu2 %vm496_vm12, %v620_v23  ;;  %1225 = vmatpush.msk.msrb.mxu3 %vm496_vm12, %v621_v24 }
 0x338   : > { %v453_v27 = vpop.permute.xlu1 %452  ;;  %v914_v52 = vpop.permute.xlu2 %913 }
 0x339   : > { %1234 = vmatpush.msk.msra.mxu2 %vm496_vm12, %v1519_v58  ;;  %1237 = vmatpush.msk.msra.mxu3 %vm496_vm12, %v1521_v59  ;;  %v451_v29 = vpop.permute.xlu0 %450 }
 0x33a   : > { %v457_v32 = vsel %vm456_vm15, %v451_v29, %v453_v27  ;;  %v458_v33 = vsel %vm456_vm15, %v453_v27, %v451_v29 }
 0x33b   : > { %v466_v34 = vmul.f32 %v464_v4, %v458_v33  ;;  %v467_v35 = vmul.f32 %v465_v5, %v457_v32 }
 0x33d   : > { %v474_v36 = vmul.f32 %v472_v30, %v466_v34  ;;  %v475_v37 = vmul.f32 %v473_v31, %v467_v35 }
 0x33e   : > { %1223 = vmatmul.msk.f32.vlgmr.msrb.gmra.mxu2 %vm491_vm13, %v623_v14  ;;  %1226 = vmatmul.msk.f32.vlgmr.msrb.gmra.mxu3 %vm491_vm13, %v623_v14 }
 0x33f   : > { %1216 = vmatpush.msk.msrb.mxu0 %vm496_vm12, %v474_v36  ;;  %1219 = vmatpush.msk.msrb.mxu1 %vm496_vm12, %v475_v37 }
 0x340   : > { %1217 = vmatmul.msk.f32.vlgmr.msrb.gmra.mxu0 %vm491_vm13, %v1510_v42  ;;  %1220 = vmatmul.msk.f32.vlgmr.msrb.gmra.mxu1 %vm491_vm13, %v1510_v42  ;;  %v696_v38 = vpop.permute.xlu1 %695  ;;  %v1051_v1 = vpop.permute.xlu2 %1050 }
 0x341   : > { %v625_v39 = vpop.permute.xlu0 %624 }
 0x346   : > { %1224 = vmatmul.msk.f32.gmra.mxu2 %vm491_vm13, %v625_v39  ;;  %1227 = vmatmul.msk.f32.gmra.mxu3 %vm491_vm13, %v625_v39 }
 0x348   : > { %1218 = vmatmul.msk.f32.gmra.mxu0 %vm491_vm13, %v1529_v60  ;;  %1221 = vmatmul.msk.f32.gmra.mxu1 %vm491_vm13, %v1529_v60  ;;  %v687_v41 = vpop.permute.xlu1 %686  ;;  %v978_v11 = vpop.permute.xlu2 %977 }
 0x349   : > { %v691_v43 = vsel %vm690_vm0, %v687_v41, %v689_v40  ;;  %v692_v44 = vsel %vm690_vm0, %v689_v40, %v687_v41  ;;  %v760_v45 = vpop.permute.xlu0 %759 }
 0x34a   : > { %v693_v42 = vmul.f32 %v692_v44, %v472_v30  ;;  %v694_v46 = vmul.f32 %v691_v43, %v473_v31 }
 0x34c   : > { %1228 = vmatpush.msk.msra.mxu0 %vm496_vm12, %v693_v42  ;;  %1231 = vmatpush.msk.msra.mxu1 %vm496_vm12, %v694_v46 }
 0x34e   : > { %1235 = vmatmul.msk.f32.vlgmr.msra.gmra.mxu2 %vm491_vm13, %v760_v45  ;;  %1238 = vmatmul.msk.f32.vlgmr.msra.gmra.mxu3 %vm491_vm13, %v760_v45 }
 0x350   : > { %1229 = vmatmul.msk.f32.vlgmr.msra.gmra.mxu0 %vm491_vm13, %v696_v38  ;;  %1232 = vmatmul.msk.f32.vlgmr.msra.gmra.mxu1 %vm491_vm13, %v696_v38  ;;  %v916_v48 = vpop.permute.xlu1 %915  ;;  %v987_v22 = vpop.permute.xlu2 %986 }
 0x351   : > { %v833_v49 = vpop.permute.xlu0 %832 }
 0x356   : > { %1236 = vmatmul.msk.f32.gmra.mxu2 %vm491_vm13, %v762_v28  ;;  %1239 = vmatmul.msk.f32.gmra.mxu3 %vm491_vm13, %v762_v28 }
 0x358   : > { %1230 = vmatmul.msk.f32.gmra.mxu0 %vm491_vm13, %v698_v47  ;;  %1233 = vmatmul.msk.f32.gmra.mxu1 %vm491_vm13, %v698_v47  ;;  %v899_v55 = vpop.permute.xlu1 %898 }
 0x359   : > { %v897_v56 = vpop.permute.xlu0 %896 }
 0x35a   : > { %v901_v57 = vsel %vm900_vm1, %v897_v56, %v899_v55  ;;  %v902_v58 = vsel %vm900_vm1, %v899_v55, %v897_v56 }
 0x35b   : > { %v909_v59 = vmul.f32 %v907_v53, %v901_v57  ;;  %v910_v60 = vmul.f32 %v908_v54, %v902_v58 }
 0x35d   : > { %v911_v61 = vmul.f32 %v909_v59, %v472_v30  ;;  %v912_v62 = vmul.f32 %v910_v60, %v473_v31 }
 0x35f   : > { %1246 = vmatpush.msk.msrb.mxu2 %vm496_vm12, %v911_v61  ;;  %1249 = vmatpush.msk.msrb.mxu3 %vm496_vm12, %v912_v62 }
 0x360   : > { %1247 = vmatmul.msk.f32.vlgmr.msrb.gmra.mxu2 %vm491_vm13, %v914_v52  ;;  %1250 = vmatmul.msk.f32.vlgmr.msrb.gmra.mxu3 %vm491_vm13, %v914_v52  ;;  %v826_v63 = vpop.permute.xlu1 %825 }
 0x361   : > { %v824_v2 = vpop.permute.xlu0 %823 }
 0x362   : > { %v828_v3 = vsel %vm827_vm2, %v824_v2, %v826_v63  ;;  %v829_v4 = vsel %vm827_vm2, %v826_v63, %v824_v2 }
 0x363   : > { %v830_v5 = vmul.f32 %v828_v3, %v1579_v16  ;;  %v831_v6 = vmul.f32 %v829_v4, %v1581_v17 }
 0x365   : > { %1240 = vmatpush.msk.msrb.mxu0 %vm496_vm12, %v830_v5  ;;  %1243 = vmatpush.msk.msrb.mxu1 %vm496_vm12, %v831_v6 }
 0x366   : > { %1241 = vmatmul.msk.f32.vlgmr.msrb.gmra.mxu0 %vm491_vm13, %v833_v49  ;;  %1244 = vmatmul.msk.f32.vlgmr.msrb.gmra.mxu1 %vm491_vm13, %v833_v49 }
 0x368   : > { %1248 = vmatmul.msk.f32.gmra.mxu2 %vm491_vm13, %v916_v48  ;;  %1251 = vmatmul.msk.f32.gmra.mxu3 %vm491_vm13, %v916_v48  ;;  %v835_v7 = vpop.permute.xlu1 %834 }
 0x369   : > { %v1053_v8 = vpop.permute.xlu0 %1052 }
 0x36a   : > { %v1055_v9 = vsel %vm1054_vm3, %v1051_v1, %v1053_v8  ;;  %v1056_v10 = vsel %vm1054_vm3, %v1053_v8, %v1051_v1 }
 0x36b   : > { %v1057_v12 = vmul.f32 %v1055_v9, %v907_v53  ;;  %v1058_v13 = vmul.f32 %v1056_v10, %v908_v54 }
 0x36d   : > { %v1059_v14 = vmul.f32 %v1057_v12, %v1579_v16  ;;  %v1060_v15 = vmul.f32 %v1058_v13, %v1581_v17 }
 0x36e   : > { %1242 = vmatmul.msk.f32.gmra.mxu0 %vm491_vm13, %v835_v7  ;;  %1245 = vmatmul.msk.f32.gmra.mxu1 %vm491_vm13, %v835_v7 }
 0x36f   : > { %1258 = vmatpush.msk.msra.mxu2 %vm496_vm12, %v1059_v14  ;;  %1261 = vmatpush.msk.msra.mxu3 %vm496_vm12, %v1060_v15 }
 0x370   : > { %v1062_v18 = vpop.permute.xlu1 %1061 }
 0x371   : > { %v980_v19 = vpop.permute.xlu0 %979  ;;  %1259 = vmatmul.msk.f32.vlgmr.msra.gmra.mxu2 %vm491_vm13, %v1062_v18  ;;  %1262 = vmatmul.msk.f32.vlgmr.msra.gmra.mxu3 %vm491_vm13, %v1062_v18 }
 0x372   : > { %v982_v20 = vsel %vm981_vm4, %v978_v11, %v980_v19  ;;  %v983_v16 = vsel %vm981_vm4, %v980_v19, %v978_v11 }
 0x373   : > { %v984_v21 = vmul.f32 %v982_v20, %v907_v53  ;;  %v985_v17 = vmul.f32 %v983_v16, %v908_v54 }
 0x375   : > { %1252 = vmatpush.msk.msra.mxu0 %vm496_vm12, %v984_v21  ;;  %1255 = vmatpush.msk.msra.mxu1 %vm496_vm12, %v985_v17 }
 0x376   : > { %1253 = vmatmul.msk.f32.vlgmr.msra.gmra.mxu0 %vm491_vm13, %v987_v22  ;;  %1256 = vmatmul.msk.f32.vlgmr.msra.gmra.mxu1 %vm491_vm13, %v987_v22 }
 0x378   : > { %v989_v23 = vpop.permute.xlu1 %988 }
 0x379   : > { %v1064_v0 = vpop.permute.xlu0 %1063 }
 0x37a   : > { %1260 = vmatmul.msk.f32.gmra.mxu2 %vm491_vm13, %v1064_v0  ;;  %1263 = vmatmul.msk.f32.gmra.mxu3 %vm491_vm13, %v1064_v0 }
 0x37e   : > { %1254 = vmatmul.msk.f32.gmra.mxu0 %vm491_vm13, %v989_v23  ;;  %1257 = vmatmul.msk.f32.gmra.mxu1 %vm491_vm13, %v989_v23 }
 0x3b1   : > { %v520_v24 = vpop.f32.mrf.mxu2  ;;  %v543_v25 = vpop.f32.mrf.mxu3 }
 0x3b9   : > { %v523_v26 = vpop.f32.mrf.mxu2  ;;  %v546_v27 = vpop.f32.mrf.mxu3 }
 0x3bd   : > { %v576_v28 = vpop.f32.mrf.mxu0  ;;  %v599_v29 = vpop.f32.mrf.mxu1 }
 0x3be   : > { %v577_v48 = vadd.f32 %v576_v28, %v520_v24  ;;  %v600_v49 = vadd.f32 %v599_v29, %v543_v25 }
 0x3c1   : > { %v653_v30 = vpop.f32.mrf.mxu2  ;;  %v676_v31 = vpop.f32.mrf.mxu3 }
 0x3c2   : > { %v682_v50 = vadd.f32 %v653_v30, %v577_v48  ;;  %v683_v51 = vadd.f32 %v676_v31, %v600_v49 }
 0x3c5   : > { %v579_v32 = vpop.f32.mrf.mxu0  ;;  %v602_v33 = vpop.f32.mrf.mxu1 }
 0x3c6   : > { %v580_v60 = vadd.f32 %v579_v32, %v523_v26  ;;  %v603_v61 = vadd.f32 %v602_v33, %v546_v27 }
 0x3c9   : > { %v656_v34 = vpop.f32.mrf.mxu2  ;;  %v679_v35 = vpop.f32.mrf.mxu3 }
 0x3ca   : > { %v684_v1 = vadd.f32 %v656_v34, %v580_v60  ;;  %v685_v2 = vadd.f32 %v679_v35, %v603_v61 }
 0x3cd   : > { %v726_v36 = vpop.f32.mrf.mxu0  ;;  %v749_v37 = vpop.f32.mrf.mxu1 }
 0x3ce   : > { %v755_v52 = vadd.f32 %v726_v36, %v682_v50  ;;  %v756_v53 = vadd.f32 %v749_v37, %v683_v51  ;;  %v1125_v36 = vld [vmem:[%s1700_s6] sm:$0xff] }
 0x3d1   : > { %v790_v38 = vpop.f32.mrf.mxu2  ;;  %v813_v39 = vpop.f32.mrf.mxu3 }
 0x3d2   : > { %v819_v56 = vadd.f32 %v790_v38, %v755_v52  ;;  %v820_v57 = vadd.f32 %v813_v39, %v756_v53  ;;  %v1126_v39 = vld [vmem:[%s1700_s6 + $0x8] sm:$0xff] }
 0x3d5   : > { %v729_v40 = vpop.f32.mrf.mxu0  ;;  %v752_v41 = vpop.f32.mrf.mxu1 }
 0x3d6   : > { %v757_v3 = vadd.f32 %v729_v40, %v684_v1  ;;  %v758_v4 = vadd.f32 %v752_v41, %v685_v2 }
 0x3d9   : > { %v793_v43 = vpop.f32.mrf.mxu2  ;;  %v816_v44 = vpop.f32.mrf.mxu3 }
 0x3da   : > { %v821_v9 = vadd.f32 %v793_v43, %v757_v3  ;;  %v822_v10 = vadd.f32 %v816_v44, %v758_v4 }
 0x3e3   : > { %v863_v45 = vpop.f32.mrf.mxu0  ;;  %v886_v42 = vpop.f32.mrf.mxu1 }
 0x3e4   : > { %v944_v46 = vpop.f32.mrf.mxu2  ;;  %v967_v47 = vpop.f32.mrf.mxu3  ;;  %v892_v62 = vadd.f32 %v863_v45, %v819_v56  ;;  %v893_v63 = vadd.f32 %v886_v42, %v820_v57 }
 0x3e6   : > { %v973_v5 = vadd.f32 %v944_v46, %v892_v62  ;;  %v974_v6 = vadd.f32 %v967_v47, %v893_v63 }
 0x3eb   : > { %v866_v54 = vpop.f32.mrf.mxu0  ;;  %v889_v55 = vpop.f32.mrf.mxu1 }
 0x3ec   : > { %v947_v58 = vpop.f32.mrf.mxu2  ;;  %v970_v59 = vpop.f32.mrf.mxu3  ;;  %v894_v15 = vadd.f32 %v866_v54, %v821_v9  ;;  %v895_v18 = vadd.f32 %v889_v55, %v822_v10 }
 0x3ee   : > { %v975_v22 = vadd.f32 %v947_v58, %v894_v15  ;;  %v976_v0 = vadd.f32 %v970_v59, %v895_v18 }
 0x3f3   : > { %v1017_v7 = vpop.f32.mrf.mxu0  ;;  %v1040_v8 = vpop.f32.mrf.mxu1 }
 0x3f4   : > { %v1046_v11 = vadd.f32 %v1017_v7, %v973_v5  ;;  %v1047_v12 = vadd.f32 %v1040_v8, %v974_v6  ;;  %v1092_v13 = vpop.f32.mrf.mxu2  ;;  %v1115_v14 = vpop.f32.mrf.mxu3 }
 0x3f6   : > { %v1121_v19 = vadd.f32 %v1092_v13, %v1046_v11  ;;  %v1122_v20 = vadd.f32 %v1115_v14, %v1047_v12 }
 0x3f8   : > { %v1140_v16 = vmul.f32 %v1121_v19, %v1121_v19  ;;  %v1141_v21 = vmul.f32 %v1122_v20, %v1122_v20  ;;  %v1127_v17 = vadd.f32 %v1122_v20, %v1121_v19 }
 0x3fa   : > { %1128 = vadd.xlane.f32.xlu2 %v1127_v17  ;;  %v1144_v23 = vadd.f32 %v1141_v21, %v1140_v16 }
 0x3fb   : > { %v1020_v24 = vpop.f32.mrf.mxu0  ;;  %v1043_v25 = vpop.f32.mrf.mxu1 }
 0x3fc   : > { %v1048_v26 = vadd.f32 %v1020_v24, %v975_v22  ;;  %v1049_v27 = vadd.f32 %v1043_v25, %v976_v0  ;;  %1145 = vadd.xlane.f32.xlu1 %v1144_v23 }
 0x3fd   : > { %v1095_v28 = vpop.f32.mrf.mxu2  ;;  %v1118_v29 = vpop.f32.mrf.mxu3 }
 0x3fe   : > { %v1123_v30 = vadd.f32 %v1095_v28, %v1048_v26  ;;  %v1124_v31 = vadd.f32 %v1118_v29, %v1049_v27 }
 0x400   : > { %v1142_v32 = vmul.f32 %v1123_v30, %v1123_v30  ;;  %v1143_v33 = vmul.f32 %v1124_v31, %v1124_v31  ;;  %v1130_v34 = vadd.f32 %v1124_v31, %v1123_v30 }
 0x402   : > { %1131 = vadd.xlane.f32.xlu0 %v1130_v34  ;;  %v1147_v35 = vadd.f32 %v1143_v33, %v1142_v32 }
 0x404   : > { %1148 = vadd.xlane.f32.xlu2 %v1147_v35 }
 0x46d   : > { %v1129_v37 = vpop.xlane.xlu2 %1128 }
 0x46e   : > { %v1133_v38 = vadd.f32 %v1129_v37, %v1125_v36 }
 0x46f   : > { %v1146_v43 = vpop.xlane.xlu1 %1145 }
 0x470   : > { %1136 = vst.msk [vmem:[%s1700_s6] sm:$0xff] %vm1135_vm5, %v1133_v38 }
 0x475   : > { %v1132_v40 = vpop.xlane.xlu0 %1131 }
 0x476   : > { %v1134_v41 = vadd.f32 %v1132_v40, %v1126_v39 }
 0x477   : > { %v1138_v44 = vld [vmem:[%s1700_s6] sm:$0xff]  ;;  %v1149_v42 = vpop.xlane.xlu2 %1148 }
 0x478   : > { %v1150_v45 = vadd.f32 %v1146_v43, %v1138_v44  ;;  %1137 = vst.msk [vmem:[%s1700_s6 + $0x8] sm:$0xff] %vm1135_vm5, %v1134_v41 }
 0x47a   : > { %1153 = vst.msk [vmem:[%s1700_s6] sm:$0xff] %vm1152_vm6, %v1150_v45 }
 0x47f   : > { %v1139_v46 = vld [vmem:[%s1700_s6 + $0x8] sm:$0xff] }
 0x480   : > { %v1151_v47 = vadd.f32 %v1149_v42, %v1139_v46 }
 0x482   : > { %1154 = vst.msk [vmem:[%s1700_s6 + $0x8] sm:$0xff] %vm1152_vm6, %v1151_v47 }
 0x483 PF: > { %s16_s25 = sadd.s32 1, %s1371_s25   ;;  %s1701_s21 = smov %s1363_s23 }
 0x484   : > { %p13_p11 = scmp.ge.s32.totalorder %s16_s25, 6   ;;  %s1702_s22 = smov %s1367_s24 }
 0x485   : > { %s1703_s23 = smov %s1706_s26  ;;  %s1704_s24 = smov %s1710_s27 }
 0x486   :  { %15 = sbr.rel (!%p13_p11) target bundleno = 3 (0x3), region = 82 }

</bundles_post_ra>
